<compile_context>
chip_gen: v7x
topology: tpu7x:2x2x1
jax: 0.10.0
libtpu: 0.0.40
codegen_flags: <defaults>
</compile_context>

<pallas_src>
import functools

import jax
import jax.numpy as jnp
from jax.experimental import pallas as pl
from jax.experimental.pallas import tpu as pltpu


def _cdiv(a, b):
    return -(-a // b)


def _round_up(a, b):
    return _cdiv(a, b) * b


# ----------------------------------------------------------------------------
# Pallas kernel: one RGCNConv layer (+ fused ReLU or log_softmax)
#
#   out[n] = sum_e agg_e[n] @ W_rel[e]                       (mean-aggregated
#          + sum_t oh[n,t] * (x[n] @ W_root[t]) + oh[n] @ b   neighbor feats)
#
# implemented as a single fused matmul over the K-concatenated features.
# ----------------------------------------------------------------------------
def rgcn_layer_kernel(x_ref, agg_ref, oh_ref, w_ref, b_ref, out_ref, *,
                      num_node_types, cout_valid, activation):
    x = x_ref[...]                                    # (TM, Cin)    bf16
    agg = agg_ref[...]                                # (TM, E*Cin)  bf16
    oh = oh_ref[...]                                  # (TM, T)      bf16

    # Mask the root features per node type on the VPU, then do ONE MXU matmul
    # over the K-concatenated operand (relation part + root part).
    parts = [agg]
    for t in range(num_node_types):
        parts.append(x * oh[:, t:t + 1])              # (TM, Cin)
    feat = jnp.concatenate(parts, axis=-1)            # (TM, (E+T)*Cin)

    acc = jnp.dot(feat, w_ref[...], preferred_element_type=jnp.float32)
    acc = acc + jnp.dot(oh, b_ref[...], preferred_element_type=jnp.float32)

    if activation == "relu":
        acc = jnp.maximum(acc, 0.0)
    elif activation == "log_softmax":
        # Output lanes are padded to a multiple of 128; mask the padding out
        # of the softmax normalization.
        lane = jax.lax.broadcasted_iota(jnp.int32, acc.shape, 1)
        acc = jnp.where(lane < cout_valid, acc, -3.0e38)
        m = jnp.max(acc, axis=-1, keepdims=True)
        lse = m + jnp.log(jnp.sum(jnp.exp(acc - m), axis=-1, keepdims=True))
        acc = acc - lse

    out_ref[...] = acc.astype(out_ref.dtype)


def rgcn_conv_pallas(x, agg, onehot, w_rel, w_root, b_root, activation,
                     tm=256):
    """One RGCNConv layer via pallas_call, tiled over nodes.

    x      : (N, Cin)         f32
    agg    : (N, E*Cin)       f32 channel-stacked mean-aggregated neighbors
    onehot : (N, T)           f32
    w_rel  : (E, Cin, Cout)   f32
    w_root : (T, Cin, Cout)   f32
    b_root : (T, Cout)        f32
    returns (N, Cout)         f32
    """
    N, cin = x.shape
    E, _, cout = w_rel.shape
    T = w_root.shape[0]
    cout_pad = _round_up(cout, 128)                   # lane-dense output

    # Pack all relation + root weights into one ((E+T)*Cin, Cout_pad) bf16
    # matrix (rows ordered to match the kernel's K-concatenated operand).
    w_all = jnp.concatenate(
        [w_rel.reshape(E * cin, cout), w_root.reshape(T * cin, cout)], axis=0)
    w_all = jnp.pad(w_all, ((0, 0), (0, cout_pad - cout))).astype(jnp.bfloat16)
    b_all = jnp.pad(b_root, ((0, 0), (0, cout_pad - cout))).astype(jnp.bfloat16)

    # Big node tiles, but keep >= 2 grid steps when possible (v7x megacore).
    tm_eff = min(tm, max(8, _round_up(_cdiv(N, 2), 8)))
    n_pad = _round_up(N, tm_eff)
    if n_pad != N:
        pad = n_pad - N
        x = jnp.pad(x, ((0, pad), (0, 0)))
        agg = jnp.pad(agg, ((0, pad), (0, 0)))
        onehot = jnp.pad(onehot, ((0, pad), (0, 0)))

    x_b = x.astype(jnp.bfloat16)
    agg_b = agg.astype(jnp.bfloat16)
    oh_b = onehot.astype(jnp.bfloat16)

    kernel = functools.partial(rgcn_layer_kernel,
                               num_node_types=T,
                               cout_valid=cout,
                               activation=activation)

    out = pl.pallas_call(
        kernel,
        out_shape=jax.ShapeDtypeStruct((n_pad, cout_pad), jnp.float32),
        grid=(n_pad // tm_eff,),
        in_specs=[
            pl.BlockSpec((tm_eff, cin), lambda i: (i, 0)),             # x
            pl.BlockSpec((tm_eff, E * cin), lambda i: (i, 0)),         # agg
            pl.BlockSpec((tm_eff, T), lambda i: (i, 0)),               # onehot
            pl.BlockSpec(((E + T) * cin, cout_pad), lambda i: (0, 0)), # W_all
            pl.BlockSpec((T, cout_pad), lambda i: (0, 0)),             # b_all
        ],
        out_specs=pl.BlockSpec((tm_eff, cout_pad), lambda i: (i, 0)),
        compiler_params=pltpu.CompilerParams(
            dimension_semantics=("parallel",),
            # explicit scoped-VMEM cap; v7x only has 64 MiB physical VMEM
            vmem_limit_bytes=48 * 1024 * 1024),
    )(x_b, agg_b, oh_b, w_all, b_all)

    return out[:N, :cout]


# ----------------------------------------------------------------------------
# JAX glue: group_input (type-dispatched gather) and mean edge aggregation
# (data-dependent scatter -> no clean Pallas rectangular-tile equivalent)
# ----------------------------------------------------------------------------
def group_input(x_dict, emb_dict, node_type, local_node_idx, in_channels):
    N = node_type.shape[0]
    h = jnp.zeros((N, in_channels), jnp.float32)
    for key, feats in x_dict.items():
        mask = node_type == key
        h = jnp.where(mask[:, None], feats[local_node_idx], h)
    for key, emb in emb_dict.items():
        mask = node_type == int(key)
        h = jnp.where(mask[:, None], emb[local_node_idx], h)
    return h


def aggregate_mean_per_edge_type(x, edge_index, edge_type, num_edge_types):
    """Returns (N, E*C) channel-stacked mean of source features over incoming
    edges of each type (0 for nodes with no such edges), matching
    MessagePassing(aggr='mean') since rel_lins are linear.

    One keyed segment_sum over dst*E + edge_type (instead of E passes)."""
    N, C = x.shape
    src, dst = edge_index[0], edge_index[1]
    gathered = x[src]                                        # (Ee, C)
    seg = dst * num_edge_types + edge_type                   # (Ee,)
    sums = jax.ops.segment_sum(gathered, seg,
                               num_segments=N * num_edge_types)      # (N*E, C)
    cnt = jax.ops.segment_sum(jnp.ones_like(seg, x.dtype), seg,
                              num_segments=N * num_edge_types)       # (N*E,)
    mean = sums / jnp.maximum(cnt, 1.0)[:, None]
    # row n*E + e, channel c  ->  column e*C + c of node n
    return mean.reshape(N, num_edge_types * C)


# ----------------------------------------------------------------------------
# Full RGCN forward (Pallas) and a pure-JAX reference
# ----------------------------------------------------------------------------
def rgcn_forward(params, x_dict, edge_index, edge_type, node_type,
                 local_node_idx, *, in_channels, num_edge_types,
                 num_node_types, num_layers):
    x = group_input(x_dict, params["emb_dict"], node_type, local_node_idx,
                    in_channels)
    onehot = (node_type[:, None] ==
              jnp.arange(num_node_types)[None, :]).astype(jnp.float32)

    for i, layer in enumerate(params["convs"]):
        agg = aggregate_mean_per_edge_type(x, edge_index, edge_type,
                                           num_edge_types)
        last = (i == num_layers - 1)
        activation = "log_softmax" if last else "relu"
        x = rgcn_conv_pallas(x, agg, onehot, layer["w_rel"], layer["w_root"],
                             layer["b_root"], activation)
        # TODO(synk): F.dropout(p=0.5, training=True) omitted; eval-mode
        # (identity) semantics are used between layers.
    return x


def rgcn_conv_ref(x, agg_stacked, onehot, w_rel, w_root, b_root, activation):
    N, cin = x.shape
    E = w_rel.shape[0]
    agg = agg_stacked.reshape(N, E, cin)
    out = jnp.einsum("nec,eco->no", agg, w_rel)
    root = jnp.einsum("nc,tco->nto", x, w_root) + b_root[None]
    out = out + jnp.einsum("nt,nto->no", onehot, root)
    if activation == "relu":
        return jnp.maximum(out, 0.0)
    return jax.nn.log_softmax(out, axis=-1)


def rgcn_forward_ref(params, x_dict, edge_index, edge_type, node_type,
                     local_node_idx, *, in_channels, num_edge_types,
                     num_node_types, num_layers):
    x = group_input(x_dict, params["emb_dict"], node_type, local_node_idx,
                    in_channels)
    onehot = (node_type[:, None] ==
              jnp.arange(num_node_types)[None, :]).astype(jnp.float32)
    for i, layer in enumerate(params["convs"]):
        agg = aggregate_mean_per_edge_type(x, edge_index, edge_type,
                                           num_edge_types)
        last = (i == num_layers - 1)
        activation = "log_softmax" if last else "relu"
        x = rgcn_conv_ref(x, agg, onehot, layer["w_rel"], layer["w_root"],
                          layer["b_root"], activation)
    return x


# ----------------------------------------------------------------------------
# Deterministic parameter construction
# ----------------------------------------------------------------------------
def glorot(key, shape):
    fan_in, fan_out = shape[-2], shape[-1]
    lim = (6.0 / (fan_in + fan_out)) ** 0.5
    return jax.random.uniform(key, shape, jnp.float32, -lim, lim)


def init_rgcn_params(key, in_channels, hidden_channels, out_channels,
                     num_layers, num_nodes_dict, x_types, num_node_types,
                     num_edge_types):
    params = {"convs": [], "emb_dict": {}}
    dims = ([in_channels] + [hidden_channels] * (num_layers - 1)
            + [out_channels])
    for l in range(num_layers):
        cin, cout = dims[l], dims[l + 1]
        key, k1, k2, k3 = jax.random.split(key, 4)
        params["convs"].append({
            "w_rel": glorot(k1, (num_edge_types, cin, cout)),
            "w_root": glorot(k2, (num_node_types, cin, cout)),
            "b_root": 0.01 * jax.random.normal(k3, (num_node_types, cout),
                                               jnp.float32),
        })
    emb_types = sorted(set(num_nodes_dict.keys()) - set(x_types))
    for t in emb_types:
        key, k = jax.random.split(key)
        params["emb_dict"][t] = glorot(k, (num_nodes_dict[t], in_channels))
    return params


# ----------------------------------------------------------------------------
if __name__ == "__main__":
    # Small, deterministic synthetic problem.
    in_channels, hidden_channels, out_channels = 16, 32, 8
    num_layers = 3
    num_node_types = 3
    num_edge_types = 4
    num_nodes_dict = {0: 60, 1: 60, 2: 60}   # per-type node storage sizes
    x_types = [0]                            # type 0 has raw features; 1,2 get embeddings
    N = 128                                  # nodes in the sampled subgraph
    E = 256                                  # edges in the sampled subgraph

    key = jax.random.PRNGKey(0)
    key, kp, kx, knt, kli, ke, ket = jax.random.split(key, 7)

    params = init_rgcn_params(kp, in_channels, hidden_channels, out_channels,
                              num_layers, num_nodes_dict, x_types,
                              num_node_types, num_edge_types)

    x_dict = {0: jax.random.normal(kx, (num_nodes_dict[0], in_channels),
                                   jnp.float32)}
    node_type = jax.random.randint(knt, (N,), 0, num_node_types, jnp.int32)
    local_node_idx = jax.random.randint(kli, (N,), 0, 60, jnp.int32)
    edge_index = jax.random.randint(ke, (2, E), 0, N, jnp.int32)
    edge_type = jax.random.randint(ket, (E,), 0, num_edge_types, jnp.int32)

    common = dict(in_channels=in_channels, num_edge_types=num_edge_types,
                  num_node_types=num_node_types, num_layers=num_layers)
    fwd = jax.jit(functools.partial(rgcn_forward, **common))
    fwd_ref = jax.jit(functools.partial(rgcn_forward_ref, **common))

    out = fwd(params, x_dict, edge_index, edge_type, node_type,
              local_node_idx)
    jax.block_until_ready(out)
    ref = fwd_ref(params, x_dict, edge_index, edge_type, node_type,
                  local_node_idx)
    jax.block_until_ready(ref)

    assert out.shape == (N, out_channels)
    assert out.dtype == jnp.float32
    # log_softmax rows must (approximately) sum to 1 in prob space
    assert bool(jnp.all(jnp.abs(jnp.sum(jnp.exp(out), axis=-1) - 1.0) < 1e-3))
    # bf16-operand kernel must track the f32 reference closely
    assert bool(jnp.max(jnp.abs(out - ref)) < 0.2)
    print("KERNEL_OK")
</pallas_src>

<mosaic_0001>
module attributes {stable_mosaic.version = 11 : i64} {
  func.func private @main(%arg0: i32) attributes {dimension_semantics = [#tpu.dimension_semantics<core_parallel>], iteration_bounds = array<i64: 2>, tpu.core_type = #tpu.core_type<sc_scalar_subcore>, window_params = []} {
    return
  }
}

module attributes {stable_mosaic.version = 11 : i64} {
  func.func private @main(%arg0: i32) attributes {dimension_semantics = [#tpu.dimension_semantics<core_parallel>], iteration_bounds = array<i64: 2>, tpu.core_type = #tpu.core_type<sc_scalar_subcore>, window_params = []} {
    return
  }
}

module attributes {stable_mosaic.version = 11 : i64} {
  func.func @rgcn_layer_kernel(%arg0: i32, %arg1: memref<64x16xbf16, #tpu.memory_space<vmem>>, %arg2: memref<64x64xbf16, #tpu.memory_space<vmem>>, %arg3: memref<64x3xbf16, #tpu.memory_space<vmem>>, %arg4: memref<112x128xbf16, #tpu.memory_space<vmem>>, %arg5: memref<3x128xbf16, #tpu.memory_space<vmem>>, %arg6: memref<64x128xf32, #tpu.memory_space<vmem>>) attributes {dimension_semantics = [#tpu.dimension_semantics<parallel>], iteration_bounds = array<i64: 2>, scalar_prefetch = 0 : i64, scratch_operands = 0 : i64, tpu.core_type = #tpu.core_type<tc>, window_params = [{transform_indices = @transform_0, window_bounds = array<i64: 64, 16>}, {transform_indices = @transform_1, window_bounds = array<i64: 64, 64>}, {transform_indices = @transform_2, window_bounds = array<i64: 64, 3>}, {pipeline_mode = #tpu.pipeline_mode<synchronous>, transform_indices = @transform_3, window_bounds = array<i64: 112, 128>}, {pipeline_mode = #tpu.pipeline_mode<synchronous>, transform_indices = @transform_4, window_bounds = array<i64: 3, 128>}, {transform_indices = @transform_5, window_bounds = array<i64: 64, 128>}]} {
    %c0 = arith.constant 0 : index
    %c0_0 = arith.constant 0 : index
    %0 = vector.load %arg1[%c0, %c0_0] : memref<64x16xbf16, #tpu.memory_space<vmem>>, vector<64x16xbf16>
    %c0_1 = arith.constant 0 : index
    %c0_2 = arith.constant 0 : index
    %1 = vector.load %arg2[%c0_1, %c0_2] : memref<64x64xbf16, #tpu.memory_space<vmem>>, vector<64x64xbf16>
    %c0_3 = arith.constant 0 : index
    %c0_4 = arith.constant 0 : index
    %2 = vector.load %arg3[%c0_3, %c0_4] : memref<64x3xbf16, #tpu.memory_space<vmem>>, vector<64x3xbf16>
    %3 = vector.extract_strided_slice %2 {offsets = [0, 0], sizes = [64, 1], strides = [1, 1]} : vector<64x3xbf16> to vector<64x1xbf16>
    %4 = vector.broadcast %3 : vector<64x1xbf16> to vector<64x16xbf16>
    %5 = arith.mulf %0, %4 : vector<64x16xbf16>
    %6 = vector.extract_strided_slice %2 {offsets = [0, 1], sizes = [64, 1], strides = [1, 1]} : vector<64x3xbf16> to vector<64x1xbf16>
    %7 = vector.broadcast %6 : vector<64x1xbf16> to vector<64x16xbf16>
    %8 = arith.mulf %0, %7 : vector<64x16xbf16>
    %9 = vector.extract_strided_slice %2 {offsets = [0, 2], sizes = [64, 1], strides = [1, 1]} : vector<64x3xbf16> to vector<64x1xbf16>
    %10 = vector.broadcast %9 : vector<64x1xbf16> to vector<64x16xbf16>
    %11 = arith.mulf %0, %10 : vector<64x16xbf16>
    %12 = tpu.concatenate %1, %5, %8, %11 in 1 : vector<64x64xbf16>, vector<64x16xbf16>, vector<64x16xbf16>, vector<64x16xbf16> -> vector<64x112xbf16>
    %c0_5 = arith.constant 0 : index
    %c0_6 = arith.constant 0 : index
    %13 = vector.load %arg4[%c0_5, %c0_6] : memref<112x128xbf16, #tpu.memory_space<vmem>>, vector<112x128xbf16>
    %cst = arith.constant dense<0.000000e+00> : vector<64x128xf32>
    %14 = tpu.matmul %12, %13, %cst {dimension_numbers = #tpu.dot_dimension_numbers<[1], [0], [0], [1], [0, 0, 1, 1], [], []>} : vector<64x112xbf16>, vector<112x128xbf16>, vector<64x128xf32> -> vector<64x128xf32>
    %c0_7 = arith.constant 0 : index
    %c0_8 = arith.constant 0 : index
    %15 = vector.load %arg5[%c0_7, %c0_8] : memref<3x128xbf16, #tpu.memory_space<vmem>>, vector<3x128xbf16>
    %cst_9 = arith.constant dense<0.000000e+00> : vector<64x128xf32>
    %16 = tpu.matmul %2, %15, %cst_9 {dimension_numbers = #tpu.dot_dimension_numbers<[1], [0], [0], [1], [0, 0, 1, 1], [], []>} : vector<64x3xbf16>, vector<3x128xbf16>, vector<64x128xf32> -> vector<64x128xf32>
    %17 = arith.addf %14, %16 : vector<64x128xf32>
    %cst_10 = arith.constant 0.000000e+00 : f32
    %18 = vector.broadcast %cst_10 : f32 to vector<64x128xf32>
    %19 = arith.maximumf %17, %18 : vector<64x128xf32>
    %c0_11 = arith.constant 0 : index
    %c0_12 = arith.constant 0 : index
    %20 = vector.load %arg6[%c0_11, %c0_12] : memref<64x128xf32, #tpu.memory_space<vmem>>, vector<64x128xf32>
    tpu.vector_store %arg6[%c0_11, %c0_12], %19 {strides = array<i32>} : memref<64x128xf32, #tpu.memory_space<vmem>>, vector<64x128xf32>,
    return
  }
  func.func @transform_0(%arg0: i32) -> (i32, i32) {
    %c0_i32 = arith.constant 0 : i32
    %c0_i32_0 = arith.constant 0 : i32
    return %arg0, %c0_i32 : i32, i32
  }
  func.func @transform_1(%arg0: i32) -> (i32, i32) {
    %c0_i32 = arith.constant 0 : i32
    %c0_i32_0 = arith.constant 0 : i32
    return %arg0, %c0_i32 : i32, i32
  }
  func.func @transform_2(%arg0: i32) -> (i32, i32) {
    %c0_i32 = arith.constant 0 : i32
    %c0_i32_0 = arith.constant 0 : i32
    return %arg0, %c0_i32 : i32, i32
  }
  func.func @transform_3(%arg0: i32) -> (i32, i32) {
    %c0_i32 = arith.constant 0 : i32
    %c0_i32_0 = arith.constant 0 : i32
    %c0_i32_1 = arith.constant 0 : i32
    return %c0_i32, %c0_i32_0 : i32, i32
  }
  func.func @transform_4(%arg0: i32) -> (i32, i32) {
    %c0_i32 = arith.constant 0 : i32
    %c0_i32_0 = arith.constant 0 : i32
    %c0_i32_1 = arith.constant 0 : i32
    return %c0_i32, %c0_i32_0 : i32, i32
  }
  func.func @transform_5(%arg0: i32) -> (i32, i32) {
    %c0_i32 = arith.constant 0 : i32
    %c0_i32_0 = arith.constant 0 : i32
    return %arg0, %c0_i32 : i32, i32
  }
}

module attributes {stable_mosaic.version = 11 : i64} {
  func.func @rgcn_layer_kernel(%arg0: i32, %arg1: memref<64x32xbf16, #tpu.memory_space<vmem>>, %arg2: memref<64x128xbf16, #tpu.memory_space<vmem>>, %arg3: memref<64x3xbf16, #tpu.memory_space<vmem>>, %arg4: memref<224x128xbf16, #tpu.memory_space<vmem>>, %arg5: memref<3x128xbf16, #tpu.memory_space<vmem>>, %arg6: memref<64x128xf32, #tpu.memory_space<vmem>>) attributes {dimension_semantics = [#tpu.dimension_semantics<parallel>], iteration_bounds = array<i64: 2>, scalar_prefetch = 0 : i64, scratch_operands = 0 : i64, tpu.core_type = #tpu.core_type<tc>, window_params = [{transform_indices = @transform_0, window_bounds = array<i64: 64, 32>}, {transform_indices = @transform_1, window_bounds = array<i64: 64, 128>}, {transform_indices = @transform_2, window_bounds = array<i64: 64, 3>}, {pipeline_mode = #tpu.pipeline_mode<synchronous>, transform_indices = @transform_3, window_bounds = array<i64: 224, 128>}, {pipeline_mode = #tpu.pipeline_mode<synchronous>, transform_indices = @transform_4, window_bounds = array<i64: 3, 128>}, {transform_indices = @transform_5, window_bounds = array<i64: 64, 128>}]} {
    %c0 = arith.constant 0 : index
    %c0_0 = arith.constant 0 : index
    %0 = vector.load %arg1[%c0, %c0_0] : memref<64x32xbf16, #tpu.memory_space<vmem>>, vector<64x32xbf16>
    %c0_1 = arith.constant 0 : index
    %c0_2 = arith.constant 0 : index
    %1 = vector.load %arg2[%c0_1, %c0_2] : memref<64x128xbf16, #tpu.memory_space<vmem>>, vector<64x128xbf16>
    %c0_3 = arith.constant 0 : index
    %c0_4 = arith.constant 0 : index
    %2 = vector.load %arg3[%c0_3, %c0_4] : memref<64x3xbf16, #tpu.memory_space<vmem>>, vector<64x3xbf16>
    %3 = vector.extract_strided_slice %2 {offsets = [0, 0], sizes = [64, 1], strides = [1, 1]} : vector<64x3xbf16> to vector<64x1xbf16>
    %4 = vector.broadcast %3 : vector<64x1xbf16> to vector<64x32xbf16>
    %5 = arith.mulf %0, %4 : vector<64x32xbf16>
    %6 = vector.extract_strided_slice %2 {offsets = [0, 1], sizes = [64, 1], strides = [1, 1]} : vector<64x3xbf16> to vector<64x1xbf16>
    %7 = vector.broadcast %6 : vector<64x1xbf16> to vector<64x32xbf16>
    %8 = arith.mulf %0, %7 : vector<64x32xbf16>
    %9 = vector.extract_strided_slice %2 {offsets = [0, 2], sizes = [64, 1], strides = [1, 1]} : vector<64x3xbf16> to vector<64x1xbf16>
    %10 = vector.broadcast %9 : vector<64x1xbf16> to vector<64x32xbf16>
    %11 = arith.mulf %0, %10 : vector<64x32xbf16>
    %12 = tpu.concatenate %1, %5, %8, %11 in 1 : vector<64x128xbf16>, vector<64x32xbf16>, vector<64x32xbf16>, vector<64x32xbf16> -> vector<64x224xbf16>
    %c0_5 = arith.constant 0 : index
    %c0_6 = arith.constant 0 : index
    %13 = vector.load %arg4[%c0_5, %c0_6] : memref<224x128xbf16, #tpu.memory_space<vmem>>, vector<224x128xbf16>
    %cst = arith.constant dense<0.000000e+00> : vector<64x128xf32>
    %14 = tpu.matmul %12, %13, %cst {dimension_numbers = #tpu.dot_dimension_numbers<[1], [0], [0], [1], [0, 0, 1, 1], [], []>} : vector<64x224xbf16>, vector<224x128xbf16>, vector<64x128xf32> -> vector<64x128xf32>
    %c0_7 = arith.constant 0 : index
    %c0_8 = arith.constant 0 : index
    %15 = vector.load %arg5[%c0_7, %c0_8] : memref<3x128xbf16, #tpu.memory_space<vmem>>, vector<3x128xbf16>
    %cst_9 = arith.constant dense<0.000000e+00> : vector<64x128xf32>
    %16 = tpu.matmul %2, %15, %cst_9 {dimension_numbers = #tpu.dot_dimension_numbers<[1], [0], [0], [1], [0, 0, 1, 1], [], []>} : vector<64x3xbf16>, vector<3x128xbf16>, vector<64x128xf32> -> vector<64x128xf32>
    %17 = arith.addf %14, %16 : vector<64x128xf32>
    %cst_10 = arith.constant 0.000000e+00 : f32
    %18 = vector.broadcast %cst_10 : f32 to vector<64x128xf32>
    %19 = arith.maximumf %17, %18 : vector<64x128xf32>
    %c0_11 = arith.constant 0 : index
    %c0_12 = arith.constant 0 : index
    %20 = vector.load %arg6[%c0_11, %c0_12] : memref<64x128xf32, #tpu.memory_space<vmem>>, vector<64x128xf32>
    tpu.vector_store %arg6[%c0_11, %c0_12], %19 {strides = array<i32>} : memref<64x128xf32, #tpu.memory_space<vmem>>, vector<64x128xf32>,
    return
  }
  func.func @transform_0(%arg0: i32) -> (i32, i32) {
    %c0_i32 = arith.constant 0 : i32
    %c0_i32_0 = arith.constant 0 : i32
    return %arg0, %c0_i32 : i32, i32
  }
  func.func @transform_1(%arg0: i32) -> (i32, i32) {
    %c0_i32 = arith.constant 0 : i32
    %c0_i32_0 = arith.constant 0 : i32
    return %arg0, %c0_i32 : i32, i32
  }
  func.func @transform_2(%arg0: i32) -> (i32, i32) {
    %c0_i32 = arith.constant 0 : i32
    %c0_i32_0 = arith.constant 0 : i32
    return %arg0, %c0_i32 : i32, i32
  }
  func.func @transform_3(%arg0: i32) -> (i32, i32) {
    %c0_i32 = arith.constant 0 : i32
    %c0_i32_0 = arith.constant 0 : i32
    %c0_i32_1 = arith.constant 0 : i32
    return %c0_i32, %c0_i32_0 : i32, i32
  }
  func.func @transform_4(%arg0: i32) -> (i32, i32) {
    %c0_i32 = arith.constant 0 : i32
    %c0_i32_0 = arith.constant 0 : i32
    %c0_i32_1 = arith.constant 0 : i32
    return %c0_i32, %c0_i32_0 : i32, i32
  }
  func.func @transform_5(%arg0: i32) -> (i32, i32) {
    %c0_i32 = arith.constant 0 : i32
    %c0_i32_0 = arith.constant 0 : i32
    return %arg0, %c0_i32 : i32, i32
  }
}

module attributes {stable_mosaic.version = 11 : i64} {
  func.func @rgcn_layer_kernel(%arg0: i32, %arg1: memref<64x32xbf16, #tpu.memory_space<vmem>>, %arg2: memref<64x128xbf16, #tpu.memory_space<vmem>>, %arg3: memref<64x3xbf16, #tpu.memory_space<vmem>>, %arg4: memref<224x128xbf16, #tpu.memory_space<vmem>>, %arg5: memref<3x128xbf16, #tpu.memory_space<vmem>>, %arg6: memref<64x128xf32, #tpu.memory_space<vmem>>) attributes {dimension_semantics = [#tpu.dimension_semantics<parallel>], iteration_bounds = array<i64: 2>, scalar_prefetch = 0 : i64, scratch_operands = 0 : i64, tpu.core_type = #tpu.core_type<tc>, window_params = [{transform_indices = @transform_0, window_bounds = array<i64: 64, 32>}, {transform_indices = @transform_1, window_bounds = array<i64: 64, 128>}, {transform_indices = @transform_2, window_bounds = array<i64: 64, 3>}, {pipeline_mode = #tpu.pipeline_mode<synchronous>, transform_indices = @transform_3, window_bounds = array<i64: 224, 128>}, {pipeline_mode = #tpu.pipeline_mode<synchronous>, transform_indices = @transform_4, window_bounds = array<i64: 3, 128>}, {transform_indices = @transform_5, window_bounds = array<i64: 64, 128>}]} {
    %c0 = arith.constant 0 : index
    %c0_0 = arith.constant 0 : index
    %0 = vector.load %arg1[%c0, %c0_0] : memref<64x32xbf16, #tpu.memory_space<vmem>>, vector<64x32xbf16>
    %c0_1 = arith.constant 0 : index
    %c0_2 = arith.constant 0 : index
    %1 = vector.load %arg2[%c0_1, %c0_2] : memref<64x128xbf16, #tpu.memory_space<vmem>>, vector<64x128xbf16>
    %c0_3 = arith.constant 0 : index
    %c0_4 = arith.constant 0 : index
    %2 = vector.load %arg3[%c0_3, %c0_4] : memref<64x3xbf16, #tpu.memory_space<vmem>>, vector<64x3xbf16>
    %3 = vector.extract_strided_slice %2 {offsets = [0, 0], sizes = [64, 1], strides = [1, 1]} : vector<64x3xbf16> to vector<64x1xbf16>
    %4 = vector.broadcast %3 : vector<64x1xbf16> to vector<64x32xbf16>
    %5 = arith.mulf %0, %4 : vector<64x32xbf16>
    %6 = vector.extract_strided_slice %2 {offsets = [0, 1], sizes = [64, 1], strides = [1, 1]} : vector<64x3xbf16> to vector<64x1xbf16>
    %7 = vector.broadcast %6 : vector<64x1xbf16> to vector<64x32xbf16>
    %8 = arith.mulf %0, %7 : vector<64x32xbf16>
    %9 = vector.extract_strided_slice %2 {offsets = [0, 2], sizes = [64, 1], strides = [1, 1]} : vector<64x3xbf16> to vector<64x1xbf16>
    %10 = vector.broadcast %9 : vector<64x1xbf16> to vector<64x32xbf16>
    %11 = arith.mulf %0, %10 : vector<64x32xbf16>
    %12 = tpu.concatenate %1, %5, %8, %11 in 1 : vector<64x128xbf16>, vector<64x32xbf16>, vector<64x32xbf16>, vector<64x32xbf16> -> vector<64x224xbf16>
    %c0_5 = arith.constant 0 : index
    %c0_6 = arith.constant 0 : index
    %13 = vector.load %arg4[%c0_5, %c0_6] : memref<224x128xbf16, #tpu.memory_space<vmem>>, vector<224x128xbf16>
    %cst = arith.constant dense<0.000000e+00> : vector<64x128xf32>
    %14 = tpu.matmul %12, %13, %cst {dimension_numbers = #tpu.dot_dimension_numbers<[1], [0], [0], [1], [0, 0, 1, 1], [], []>} : vector<64x224xbf16>, vector<224x128xbf16>, vector<64x128xf32> -> vector<64x128xf32>
    %c0_7 = arith.constant 0 : index
    %c0_8 = arith.constant 0 : index
    %15 = vector.load %arg5[%c0_7, %c0_8] : memref<3x128xbf16, #tpu.memory_space<vmem>>, vector<3x128xbf16>
    %cst_9 = arith.constant dense<0.000000e+00> : vector<64x128xf32>
    %16 = tpu.matmul %2, %15, %cst_9 {dimension_numbers = #tpu.dot_dimension_numbers<[1], [0], [0], [1], [0, 0, 1, 1], [], []>} : vector<64x3xbf16>, vector<3x128xbf16>, vector<64x128xf32> -> vector<64x128xf32>
    %17 = arith.addf %14, %16 : vector<64x128xf32>
    %18 = tpu.iota {dimensions = array<i32: 1>} : vector<64x128xi32>
    %c8_i32 = arith.constant 8 : i32
    %19 = vector.broadcast %c8_i32 : i32 to vector<64x128xi32>
    %20 = arith.cmpi slt, %18, %19 : vector<64x128xi32>
    %cst_10 = arith.constant -3.000000e+38 : f32
    %21 = vector.broadcast %cst_10 : f32 to vector<64x128xf32>
    %22 = arith.select %20, %17, %21 : vector<64x128xi1>, vector<64x128xf32>
    %cst_11 = arith.constant dense<0xFF800000> : vector<64xf32>
    %23 = vector.multi_reduction <maximumf>, %22, %cst_11 [1] : vector<64x128xf32> to vector<64xf32>
    %24 = vector.shape_cast %23 : vector<64xf32> to vector<64x1xf32>
    %25 = vector.broadcast %24 : vector<64x1xf32> to vector<64x128xf32>
    %26 = arith.subf %22, %25 : vector<64x128xf32>
    %27 = math.exp %26 : vector<64x128xf32>
    %cst_12 = arith.constant dense<0.000000e+00> : vector<64xf32>
    %28 = vector.multi_reduction <add>, %27, %cst_12 [1] : vector<64x128xf32> to vector<64xf32>
    %29 = vector.shape_cast %28 : vector<64xf32> to vector<64x1xf32>
    %30 = math.log %29 : vector<64x1xf32>
    %31 = arith.addf %24, %30 : vector<64x1xf32>
    %32 = vector.broadcast %31 : vector<64x1xf32> to vector<64x128xf32>
    %33 = arith.subf %22, %32 : vector<64x128xf32>
    %c0_13 = arith.constant 0 : index
    %c0_14 = arith.constant 0 : index
    %34 = vector.load %arg6[%c0_13, %c0_14] : memref<64x128xf32, #tpu.memory_space<vmem>>, vector<64x128xf32>
    tpu.vector_store %arg6[%c0_13, %c0_14], %33 {strides = array<i32>} : memref<64x128xf32, #tpu.memory_space<vmem>>, vector<64x128xf32>,
    return
  }
  func.func @transform_0(%arg0: i32) -> (i32, i32) {
    %c0_i32 = arith.constant 0 : i32
    %c0_i32_0 = arith.constant 0 : i32
    return %arg0, %c0_i32 : i32, i32
  }
  func.func @transform_1(%arg0: i32) -> (i32, i32) {
    %c0_i32 = arith.constant 0 : i32
    %c0_i32_0 = arith.constant 0 : i32
    return %arg0, %c0_i32 : i32, i32
  }
  func.func @transform_2(%arg0: i32) -> (i32, i32) {
    %c0_i32 = arith.constant 0 : i32
    %c0_i32_0 = arith.constant 0 : i32
    return %arg0, %c0_i32 : i32, i32
  }
  func.func @transform_3(%arg0: i32) -> (i32, i32) {
    %c0_i32 = arith.constant 0 : i32
    %c0_i32_0 = arith.constant 0 : i32
    %c0_i32_1 = arith.constant 0 : i32
    return %c0_i32, %c0_i32_0 : i32, i32
  }
  func.func @transform_4(%arg0: i32) -> (i32, i32) {
    %c0_i32 = arith.constant 0 : i32
    %c0_i32_0 = arith.constant 0 : i32
    %c0_i32_1 = arith.constant 0 : i32
    return %c0_i32, %c0_i32_0 : i32, i32
  }
  func.func @transform_5(%arg0: i32) -> (i32, i32) {
    %c0_i32 = arith.constant 0 : i32
    %c0_i32_0 = arith.constant 0 : i32
    return %arg0, %c0_i32 : i32, i32
  }
}

</mosaic_0001>

<bundles_post_ra>
// kernel: rgcn_forward.3
= control target key start
LH: loop header
LB: loop body
LE: loop exit
PB: predicated region body
PF: predicated region fallthrough
CT: control target
= control target key end

     0   :  { %s1270_s18 = smov 0   ;;  %s1518_s0 = inlined_call_operand.vmem [shape: bf16[128,16], index: 0, kind: input, shape index: {}]   ;;  %s1519_s1 = inlined_call_operand.vmem [shape: bf16[128,64], index: 1, kind: input, shape index: {}]   ;;  %s1520_s2 = inlined_call_operand.vmem [shape: bf16[128,3], index: 2, kind: input, shape index: {}]   ;;  %s1521_s3 = inlined_call_operand.vmem [shape: bf16[112,128], index: 3, kind: input, shape index: {}]   ;;  %s1522_s4 = inlined_call_operand.vmem [shape: bf16[3,128], index: 4, kind: input, shape index: {}]   ;;  %s1523_s5 = inlined_call_operand.vmem [shape: f32[128,128], index: 5, kind: output, shape index: {}]  }
   0x1 LB: > { %s1060_s19 = sadd.s32 4294967295, %s1230_s18   ;;  %p1064_p0 = scmp.ge.s32.totalorder %s1230_s18, 1  ;;  %s1230_s18 = sphi %s1270_s18, %s15_s18  }
   0x2   : > { %p210_p1 = scmp.lt.s32.totalorder %s1230_s18, 3 }
   0x4   : > { %p211_p2 = pnand %p1064_p0, %p210_p1 }
   0x5   : > { %s1065_s20 = sshll.u32 (!%p211_p2), %s1060_s19, 3  ;;  %v1232_v0 = vmov (!%p211_p2), 0   ;;  %v1233_v6 = vmov (!%p211_p2), 1   ;;  %v1234_v9 = vmov (!%p211_p2), 2   ;;  %v1235_v11 = vmov (!%p211_p2), 839922192  }
   0x6   : > { %214 = sbr.rel (%p211_p2) target bundleno = 550 (0x226), region = 40  ;;  %1197 = vset.pattern.permute.xlu1 (!%p211_p2), %v1232_v0  ;;  %1196 = vset.pattern.permute.xlu0 (!%p211_p2), %v1232_v0  ;;  %p249_p3 = scmp.lt.s32.totalorder (!%p211_p2), %s1065_s20, 15  ;;  %v303_v12 = vunpack.c.l.s4 (!%p211_p2), %v1235_v11  ;;  %v305_v13 = vlaneseq (!%p211_p2)  ;;  %v1367_v38 = vld [vmem:[%s1521_s3] sm:$0xff] (!%p211_p2)   ;;  %v1385_v46 = vld [vmem:[%s1521_s3 + $0x8] sm:$0xff] (!%p211_p2)   ;;  %v1396_v54 = vld [vmem:[%s1521_s3 + $0x10] sm:$0xff] (!%p211_p2)   ;;  %vm776_vm0 = vcmask (!%p211_p2), 1040384  }
   0x7   : > { %s1236_s6 = smov (!%p211_p2), 64   ;;  %1158 = vmatprep.subr.bf16.mxu1 (!%p211_p2), %v1367_v38  ;;  %v1407_v59 = vld [vmem:[%s1521_s3 + $0x18] sm:$0xff] (!%p211_p2)   ;;  %s1237_s15 = smov (!%p211_p2), 80   ;;  %vm777_vm1 = vcmask (!%p211_p2), 1041408   ;;  %v1238_v61 = vmov (!%p211_p2), 65535   ;;  %vm763_vm2 = vcmask (!%p211_p2), 23552  }
   0x8   : > { %v304_v14 = vunpack.c.0.s8 (!%p211_p2), %v303_v12  ;;  %v306_v15 = vshrl.u32 (!%p211_p2), %v305_v13, 7  ;;  %1165 = vmatpush3.bf16.msra.mxu1 (!%p211_p2), %v1367_v38  ;;  %v778_v62 = vsel (!%p211_p2), %vm776_vm0, 4294967295, %v1238_v61  ;;  %v742_v63 = vld [vmem:[%s1522_s4] sm:$0x3] (!%p211_p2)  ;;  %vm697_vm3 = vcmask (!%p211_p2), 523264  }
   0x9   : > { %1159 = vmatprep.subr.bf16.mxu1 (!%p211_p2), %v1385_v46  ;;  %vm710_vm4 = vcmask (!%p211_p2), 654336   ;;  %vm719_vm5 = vcmask (!%p211_p2), 785408   ;;  %vm890_vm6 = vcmask (!%p211_p2), 916480  }
   0xa   : > { %v1333_v16 = vsub.s32 (!%p211_p2), %v304_v14, %v306_v15  ;;  %v1217_v14 = vld [vmem:[%s1521_s3 + $0x20] sm:$0xff] (!%p211_p2)  }
   0xc   : > { %1166 = vmatpush3.bf16.msra.mxu1 (!%p211_p2), %v1385_v46 }
   0xd   : > { %s1525_s20 = smov (!%p249_p3, %s1065_s20), 15  ;;  %1160 = vmatprep.subr.bf16.mxu1 %v1396_v54 }
   0xe   : > { %s1281_s21 = sshll.u32 %s1525_s20, 2 }
   0xf   : > { %s264_s24 = scalar_lea.vmem %s1520_s2, %s1281_s21  ;;  %s1331_s27 = scalar_lea.vmem %s1519_s1, %s1281_s21 }
  0x10   : > { %v1287_v1 = vld [vmem:[%s264_s24 + $0x18] sm:$0xf]  ;;  %v1289_v2 = vld [vmem:[%s264_s24 + $0x10] sm:$0xf]  ;;  %v1293_v3 = vld [vmem:[%s264_s24 + $0x1c] sm:$0xf]  ;;  %s1339_s30 = scalar_lea.vmem %s1518_s0, %s1281_s21  ;;  %1167 = vmatpush3.bf16.msra.mxu1 %v1396_v54 }
  0x11   : > { %371 = vperm.xlu1 %1197, %v1287_v1   ;;  %347 = vperm.xlu0 %1196, %v1289_v2   ;;  %v1295_v4 = vld [vmem:[%s264_s24 + $0x14] sm:$0xf]  ;;  %v1299_v5 = vld [vmem:[%s264_s24 + $0x4] sm:$0xf]  ;;  %v1303_v7 = vld [vmem:[%s264_s24 + $0xc] sm:$0xf] }
  0x12   : > { %v1305_v8 = vld [vmem:[%s264_s24] sm:$0xf]  ;;  %v1315_v10 = vld [vmem:[%s264_s24 + $0x8] sm:$0xf]  ;;  %v1343_v20 = vld [vmem:[%s1339_s30 + $0x10] sm:$0xf]  ;;  %1161 = vmatprep.subr.bf16.mxu1 %v1407_v59 }
  0x13   : > { %v1347_v22 = vld [vmem:[%s1339_s30 + $0x18] sm:$0xf]  ;;  %v1350_v24 = vld [vmem:[%s1339_s30 + $0x1c] sm:$0xf]  ;;  %v1356_v29 = vld [vmem:[%s1339_s30 + $0x14] sm:$0xf]  ;;  %v1089_v15 = vcombine.low %v1305_v8, %v1299_v5 }
  0x14   : > { %v1370_v39 = vld [vmem:[%s1339_s30 + $0x4] sm:$0xf]  ;;  %v1376_v42 = vld [vmem:[%s1339_s30] sm:$0xf]  ;;  %1168 = vmatpush3.bf16.msra.mxu1 %v1407_v59  ;;  %s1239_s24 = smov 96  }
  0x15   : > { %383 = vperm.xlu1 %1197, %v1293_v3   ;;  %359 = vperm.xlu0 %1196, %v1295_v4  }
  0x16   : > { %1162 = vmatprep.subr.bf16.mxu1 %v1217_v14  ;;  %1128 = vmatprep.mubr.msk.bf16.mxu0 %vm763_vm2, %v1089_v15  ;;  %v1209_v15 = vld [vmem:[%s1331_s27 + $0x18] sm:$0xff]  }
  0x18   : > { %1169 = vmatpush3.bf16.msra.mxu1 %v1217_v14 }
  0x19   : > { %1198 = vset.pattern.permute.xlu1 %v1233_v6  ;;  %311 = vperm.xlu0 %1196, %v1299_v5  }
  0x1a   : > { %457 = vperm.xlu1 %1198, %v1295_v4  }
  0x1d   : > { %335 = vperm.xlu0 %1196, %v1303_v7  }
  0x1e   : > { %1199 = vset.pattern.permute.xlu1 %v1232_v0 }
  0x1f   : > { %299 = vperm.xlu1 %1199, %v1305_v8  }
  0x21   : > { %1203 = vset.pattern.permute.xlu0 %v1233_v6 }
  0x22   : > { %446 = vperm.xlu0 %1203, %v1289_v2  }
  0x23   : > { %1200 = vset.pattern.permute.xlu1 %v1233_v6 }
  0x24   : > { %468 = vperm.xlu1 %1200, %v1287_v1  }
  0x26   : > { %435 = vperm.xlu0 %1203, %v1303_v7  }
  0x28   : > { %479 = vperm.xlu1 %1200, %v1293_v3  }
  0x2a   : > { %1207 = vset.pattern.permute.xlu0 %v1234_v9 }
  0x2b   : > { %542 = vperm.xlu0 %1207, %v1289_v2  }
  0x2c   : > { %1201 = vset.pattern.permute.xlu1 %v1234_v9 }
  0x2d   : > { %553 = vperm.xlu1 %1201, %v1295_v4  }
  0x2f   : > { %564 = vperm.xlu0 %1207, %v1287_v1  }
  0x31   : > { %1202 = vset.pattern.permute.xlu1 %v1232_v0  ;;  %v779_v0 = vsel %vm777_vm1, %v778_v62, 0 }
  0x32   : > { %323 = vperm.xlu1 %1202, %v1315_v10   ;;  %v781_v12 = vand.u32 %v779_v0, %v742_v63 }
  0x33   : > { %520 = vperm.xlu0 %1207, %v1315_v10  }
  0x34   : > { %1126 = vmatprep.subr.bf16.mxu0 %v781_v12 }
  0x35   : > { %1127 = vmatpush3.bf16.msra.mxu0 %v781_v12 }
  0x36   : > { %1204 = vset.pattern.permute.xlu1 %v1233_v6  ;;  %1136 = vmatprep.subr.bf16.mxu0 %v1367_v38 }
  0x37   : > { %402 = vperm.xlu1 %1204, %v1305_v8  }
  0x3b   : > { %413 = vperm.xlu1 %1204, %v1299_v5  }
  0x3f   : > { %1205 = vset.pattern.permute.xlu1 %v1234_v9 }
  0x40   : > { %575 = vperm.xlu1 %1205, %v1293_v3  }
  0x44   : > { %1206 = vset.pattern.permute.xlu1 %v1233_v6 }
  0x45   : > { %424 = vperm.xlu1 %1206, %v1315_v10  }
  0x49   : > { %1208 = vset.pattern.permute.xlu1 %v1234_v9 }
  0x4a   : > { %498 = vperm.xlu1 %1208, %v1305_v8   ;;  %v1439_v8 = vld [vmem:[%s1339_s30 + $0xc] sm:$0xf] }
  0x4e   : > { %509 = vperm.xlu1 %1208, %v1299_v5  }
  0x52   : > { %531 = vperm.xlu1 %1208, %v1303_v7  }
  0x90   : > { %v372_v17 = vpop.permute.xlu1 %371  ;;  %v348_v18 = vpop.permute.xlu0 %347 }
  0x91   : > { %v356_v19 = vrot.slane %v348_v18, %v1333_v16  ;;  %v380_v21 = vrot.slane %v372_v17, %v1333_v16 }
  0x93   : > { %v397_v26 = vmul.bf16 %v356_v19, %v1343_v20  ;;  %v399_v30 = vmul.bf16 %v380_v21, %v1347_v22  ;;  %v1090_v19 = vcombine.low %v1315_v10, %v1303_v7  ;;  %v1220_v21 = vld [vmem:[%s1521_s3 + $0x28] sm:$0xff]  }
  0x94   : > { %v384_v23 = vpop.permute.xlu1 %383  ;;  %v360_v25 = vpop.permute.xlu0 %359  ;;  %1163 = vmatprep.subr.bf16.mxu1 %v1220_v21 }
  0x95   : > { %v392_v27 = vrot.slane %v384_v23, %v1333_v16  ;;  %v368_v28 = vrot.slane %v360_v25, %v1333_v16  ;;  %1129 = vmatmul.mubr.msk.bf16.vlgmr.msra.gmra.mrb[0].mxu0 %vm763_vm2, %v1090_v19  ;;  %1170 = vmatpush3.bf16.msra.mxu1 %v1220_v21 }
  0x96   : > { %1137 = vmatpush3.bf16.msra.mxu0 %v1367_v38 }
  0x97   : > { %v400_v31 = vmul.bf16 %v392_v27, %v1350_v24  ;;  %v398_v32 = vmul.bf16 %v368_v28, %v1356_v29  ;;  %1138 = vmatprep.subr.bf16.mxu0 %v1385_v46 }
  0x98   : > { %v312_v33 = vpop.permute.xlu0 %311 }
  0x99   : > { %v458_v34 = vpop.permute.xlu1 %457  ;;  %v1080_v35 = vcombine.low %v399_v30, %v400_v31  ;;  %v1079_v36 = vcombine.low %v397_v26, %v398_v32  ;;  %v320_v37 = vrot.slane %v312_v33, %v1333_v16  ;;  %v1221_v30 = vld [vmem:[%s1521_s3 + $0x30] sm:$0xff]   ;;  %v1091_v33 = vcombine.low %v1289_v2, %v1295_v4 }
  0x9a   : > { %v466_v45 = vrot.slane %v458_v34, %v1333_v16  ;;  %1139 = vmatpush3.bf16.msra.mxu0 %v1385_v46  ;;  %1164 = vmatprep.subr.bf16.mxu1 %v1221_v30  ;;  %v1092_v34 = vcombine.low %v1287_v1, %v1293_v3 }
  0x9b   : > { %639 = vrot.lane.b32.xlu0 %v1080_v35, %s1236_s6  ;;  %637 = vrot.lane.b32.xlu1 %v1079_v36, %s1236_s6  ;;  %v394_v43 = vmul.bf16 %v320_v37, %v1370_v39 }
  0x9c   : > { %v1372_v40 = vpop.permute.xlu0 %335  ;;  %v494_v52 = vmul.bf16 %v466_v45, %v1356_v29  ;;  %1140 = vmatprep.subr.bf16.mxu0 %v1396_v54  ;;  %1171 = vmatpush3.bf16.msra.mxu1 %v1221_v30 }
  0x9d   : > { %v344_v7 = vrot.slane %v1372_v40, %v1333_v16  ;;  %1132 = vmatprep.mubr.msk.bf16.mxu0 %vm763_vm2, %v1091_v33 }
  0x9e   : > { %v300_v41 = vpop.permute.xlu1 %299  ;;  %1141 = vmatpush3.bf16.msra.mxu0 %v1396_v54 }
  0x9f   : > { %v308_v44 = vrot.slane %v300_v41, %v1333_v16  ;;  %v396_v28 = vmul.bf16 %v344_v7, %v1439_v8  ;;  %1133 = vmatmul.mubr.msk.bf16.gmra.mrb[4].mxu0 %vm763_vm2, %v1092_v34  ;;  %1142 = vmatprep.subr.bf16.mxu0 %v1407_v59 }
  0xa1   : > { %v393_v47 = vmul.bf16 %v308_v44, %v1376_v42  ;;  %v447_v48 = vpop.permute.xlu0 %446 }
  0xa2   : > { %v455_v49 = vrot.slane %v447_v48, %v1333_v16  ;;  %1143 = vmatpush3.bf16.msra.mxu0 %v1407_v59 }
  0xa3   : > { %v469_v50 = vpop.permute.xlu1 %468  ;;  %v1077_v51 = vcombine.low %v393_v47, %v394_v43  ;;  %1144 = vmatprep.subr.bf16.mxu0 %v1217_v14 }
  0xa4   : > { %v493_v53 = vmul.bf16 %v455_v49, %v1343_v20  ;;  %v477_v56 = vrot.slane %v469_v50, %v1333_v16 }
  0xa5   : > { %633 = vrot.lane.b32.xlu0 %v1077_v51, %s1236_s6  ;;  %v1399_v55 = vpop.permute.xlu0 %435 }
  0xa6   : > { %v1083_v57 = vcombine.low %v493_v53, %v494_v52  ;;  %v495_v6 = vmul.bf16 %v477_v56, %v1347_v22  ;;  %1145 = vmatpush3.bf16.msra.mxu0 %v1217_v14  ;;  %v444_v45 = vrot.slane %v1399_v55, %v1333_v16 }
  0xa7   : > { %v480_v58 = vpop.permute.xlu1 %479  ;;  %1146 = vmatprep.subr.bf16.mxu0 %v1220_v21 }
  0xa8   : > { %v488_v60 = vrot.slane %v480_v58, %v1333_v16  ;;  %665 = vrot.lane.b32.xlu1 %v1083_v57, %s1237_s15 }
  0xaa   : > { %v496_v9 = vmul.bf16 %v488_v60, %v1350_v24  ;;  %v543_v11 = vpop.permute.xlu0 %542  ;;  %1147 = vmatpush3.bf16.msra.mxu0 %v1220_v21 }
  0xab   : > { %v551_v13 = vrot.slane %v543_v11, %v1333_v16  ;;  %1148 = vmatprep.subr.bf16.mxu0 %v1221_v30 }
  0xac   : > { %v554_v17 = vpop.permute.xlu1 %553  ;;  %v1084_v18 = vcombine.low %v495_v6, %v496_v9  ;;  %v1210_v9 = vld [vmem:[%s1331_s27 + $0x10] sm:$0xff]  }
  0xad   : > { %v589_v23 = vmul.bf16 %v551_v13, %v1343_v20  ;;  %v562_v25 = vrot.slane %v554_v17, %v1333_v16  ;;  %v1442_v20 = vld [vmem:[%s1339_s30 + $0x8] sm:$0xf] }
  0xae   : > { %667 = vrot.lane.b32.xlu1 %v1084_v18, %s1237_s15  ;;  %v565_v36 = vpop.permute.xlu0 %564  ;;  %1149 = vmatpush3.bf16.msra.mxu0 %v1221_v30 }
  0xaf   : > { %v590_v5 = vmul.bf16 %v562_v25, %v1356_v29  ;;  %v573_v2 = vrot.slane %v565_v36, %v1333_v16  ;;  %v1211_v25 = vld [vmem:[%s1331_s27] sm:$0xff]  }
  0xb1   : > { %v324_v10 = vpop.permute.xlu1 %323  ;;  %v1087_v26 = vcombine.low %v589_v23, %v590_v5  ;;  %v591_v41 = vmul.bf16 %v573_v2, %v1347_v22  ;;  %v492_v22 = vmul.bf16 %v444_v45, %v1439_v8 }
  0xb2   : > { %v332_v27 = vrot.slane %v324_v10, %v1333_v16  ;;  %v521_v52 = vpop.permute.xlu0 %520 }
  0xb3   : > { %693 = vrot.lane.b32.xlu0 %v1087_v26, %s1239_s24  ;;  %v529_v55 = vrot.slane %v521_v52, %v1333_v16 }
  0xb4   : > { %v395_v29 = vmul.bf16 %v332_v27, %v1442_v20 }
  0xb5   : > { %v587_v61 = vmul.bf16 %v529_v55, %v1442_v20 }
  0xb6   : > { %v403_v31 = vpop.permute.xlu1 %402  ;;  %v1078_v32 = vcombine.low %v395_v29, %v396_v28 }
  0xb7   : > { %v411_v35 = vrot.slane %v403_v31, %v1333_v16 }
  0xb8   : > { %635 = vrot.lane.b32.xlu1 %v1078_v32, %s1236_s6 }
  0xb9   : > { %v489_v4 = vmul.bf16 %v411_v35, %v1376_v42 }
  0xba   : > { %v414_v37 = vpop.permute.xlu1 %413 }
  0xbb   : > { %v422_v38 = vrot.slane %v414_v37, %v1333_v16 }
  0xbd   : > { %v490_v1 = vmul.bf16 %v422_v38, %v1370_v39 }
  0xbf   : > { %v576_v3 = vpop.permute.xlu1 %575  ;;  %v1081_v40 = vcombine.low %v489_v4, %v490_v1 }
  0xc0   : > { %v584_v43 = vrot.slane %v576_v3, %v1333_v16 }
  0xc1   : > { %661 = vrot.lane.b32.xlu0 %v1081_v40, %s1237_s15 }
  0xc2   : > { %v592_v44 = vmul.bf16 %v584_v43, %v1350_v24 }
  0xc4   : > { %v425_v46 = vpop.permute.xlu1 %424  ;;  %v1088_v47 = vcombine.low %v591_v41, %v592_v44 }
  0xc5   : > { %v433_v48 = vrot.slane %v425_v46, %v1333_v16 }
  0xc6   : > { %695 = vrot.lane.b32.xlu1 %v1088_v47, %s1239_s24 }
  0xc7   : > { %v491_v49 = vmul.bf16 %v433_v48, %v1442_v20 }
  0xc9   : > { %v499_v50 = vpop.permute.xlu1 %498  ;;  %v1082_v51 = vcombine.low %v491_v49, %v492_v22 }
  0xca   : > { %v507_v24 = vrot.slane %v499_v50, %v1333_v16 }
  0xcb   : > { %663 = vrot.lane.b32.xlu0 %v1082_v51, %s1237_s15 }
  0xcc   : > { %v585_v56 = vmul.bf16 %v507_v24, %v1376_v42 }
  0xcd   : > { %v510_v53 = vpop.permute.xlu1 %509 }
  0xce   : > { %v518_v54 = vrot.slane %v510_v53, %v1333_v16 }
  0xd0   : > { %v586_v57 = vmul.bf16 %v518_v54, %v1370_v39 }
  0xd1   : > { %v532_v58 = vpop.permute.xlu1 %531 }
  0xd2   : > { %v540_v59 = vrot.slane %v532_v58, %v1333_v16  ;;  %v1085_v60 = vcombine.low %v585_v56, %v586_v57 }
  0xd4   : > { %v588_v62 = vmul.bf16 %v540_v59, %v1439_v8  ;;  %689 = vrot.lane.b32.xlu1 %v1085_v60, %s1239_s24  ;;  %v1216_v8 = vld [vmem:[%s1331_s27 + $0x8] sm:$0xff]   ;;  %s1072_s27 = sshll.u32 %s1525_s20, 3 }
  0xd5   : > { %s270_s30 = scalar_lea.vmem %s1523_s5, %s1072_s27 }
  0xd6   : > { %v1086_v63 = vcombine.low %v587_v61, %v588_v62 }
  0xd8   : > { %691 = vrot.lane.b32.xlu0 %v1086_v63, %s1239_s24 }
 0x10d   : > { %v638_v0 = vpop.permute.xlu1 %637  ;;  %v640_v6 = vpop.permute.xlu0 %639 }
 0x10e   : > { %v706_v39 = vsel %vm697_vm3, %v1210_v9, %v638_v0  ;;  %v709_v18 = vsel %vm697_vm3, %v1209_v15, %v640_v6 }
 0x117   : > { %v634_v42 = vpop.permute.xlu0 %633 }
 0x118   : > { %v700_v7 = vsel %vm697_vm3, %v1211_v25, %v634_v42 }
 0x11a   : > { %v666_v16 = vpop.permute.xlu1 %665 }
 0x11b   : > { %v716_v11 = vsel %vm710_vm4, %v706_v39, %v666_v16 }
 0x120   : > { %v668_v14 = vpop.permute.xlu1 %667 }
 0x121   : > { %v718_v19 = vsel %vm710_vm4, %v709_v18, %v668_v14 }
 0x125   : > { %v694_v12 = vpop.permute.xlu0 %693 }
 0x126   : > { %v725_v13 = vsel %vm719_vm5, %v716_v11, %v694_v12 }
 0x127   : > { %1154 = vmatprep.mubr.msk.bf16.mxu1 %vm890_vm6, %v725_v13 }
 0x12a   : > { %v636_v17 = vpop.permute.xlu1 %635 }
 0x12b   : > { %v703_v28 = vsel %vm697_vm3, %v1216_v8, %v636_v17 }
 0x133   : > { %v662_v5 = vpop.permute.xlu0 %661 }
 0x134   : > { %v712_v10 = vsel %vm710_vm4, %v700_v7, %v662_v5 }
 0x138   : > { %v696_v21 = vpop.permute.xlu1 %695 }
 0x139   : > { %v727_v23 = vsel %vm719_vm5, %v718_v19, %v696_v21 }
 0x13a   : > { %1155 = vmatmul.mubr.msk.bf16.vlgmr.msra.gmra.mrb[0].mxu1 %vm890_vm6, %v727_v23 }
 0x13d   : > { %v664_v20 = vpop.permute.xlu0 %663 }
 0x13e   : > { %v714_v29 = vsel %vm710_vm4, %v703_v28, %v664_v20 }
 0x146   : > { %v690_v26 = vpop.permute.xlu1 %689 }
 0x147   : > { %v721_v27 = vsel %vm719_vm5, %v712_v10, %v690_v26 }
 0x148   : > { %1150 = vmatprep.mubr.msk.bf16.mxu0 %vm890_vm6, %v721_v27 }
 0x14a   : > { %v692_v30 = vpop.permute.xlu0 %691 }
 0x14b   : > { %v723_v31 = vsel %vm719_vm5, %v714_v29, %v692_v30 }
 0x14c   : > { %1151 = vmatmul.mubr.msk.bf16.vlgmr.msra.gmra.mrb[0].mxu0 %vm890_vm6, %v723_v31 }
 0x172   : > { %v1134_v32 = vpop.f32.mrb[4].mxu0 }
 0x173   : > { %v833_v33 = vpop.f32.mrb[5].mxu0 }
 0x174   : > { %v1135_v34 = vpop.f32.mrb[6].mxu0 }
 0x175   : > { %v836_v35 = vpop.f32.mrb[7].mxu0 }
 0x20d   : > { %v1156_v36 = vpop.f32.mrb[0].mxu1 }
 0x20e   : > { %v958_v37 = vadd.f32 %v1156_v36, %v1134_v32  ;;  %v949_v38 = vpop.f32.mrb[1].mxu1 }
 0x20f   : > { %v950_v2 = vadd.f32 %v949_v38, %v833_v33  ;;  %v1157_v4 = vpop.f32.mrb[2].mxu1 }
 0x210   : > { %v970_v1 = vmax.f32 %v958_v37, 0.0  ;;  %v961_v3 = vadd.f32 %v1157_v4, %v1135_v34  ;;  %v952_v40 = vpop.f32.mrb[3].mxu1 }
 0x211   : > { %v968_v41 = vmax.f32 %v950_v2, 0.0  ;;  %v953_v43 = vadd.f32 %v952_v40, %v836_v35 }
 0x212   : > { %978 = vst [vmem:[%s270_s30 + $0x30] sm:$0xff] %v970_v1  ;;  %v971_v44 = vmax.f32 %v961_v3, 0.0 }
 0x213   : > { %976 = vst [vmem:[%s270_s30 + $0x20] sm:$0xff] %v968_v41  ;;  %v969_v45 = vmax.f32 %v953_v43, 0.0 }
 0x214   : > { %979 = vst [vmem:[%s270_s30 + $0x38] sm:$0xff] %v971_v44 }
 0x215   : > { %977 = vst [vmem:[%s270_s30 + $0x28] sm:$0xff] %v969_v45 }
 0x21f   : > { %v1152_v46 = vpop.f32.mrb[0].mxu0 }
 0x220   : > { %v966_v47 = vmax.f32 %v1152_v46, 0.0  ;;  %v933_v48 = vpop.f32.mrb[1].mxu0 }
 0x221   : > { %v964_v22 = vmax.f32 %v933_v48, 0.0  ;;  %v1153_v49 = vpop.f32.mrb[2].mxu0 }
 0x222   : > { %974 = vst [vmem:[%s270_s30 + $0x10] sm:$0xff] %v966_v47  ;;  %v967_v50 = vmax.f32 %v1153_v49, 0.0  ;;  %v936_v51 = vpop.f32.mrb[3].mxu0 }
 0x223   : > { %972 = vst [vmem:[%s270_s30] sm:$0xff] %v964_v22  ;;  %v965_v24 = vmax.f32 %v936_v51, 0.0 }
 0x224   : > { %975 = vst [vmem:[%s270_s30 + $0x18] sm:$0xff] %v967_v50 }
 0x225   : > { %973 = vst [vmem:[%s270_s30 + $0x8] sm:$0xff] %v965_v24 }
 0x226 PF: > { %s15_s18 = sadd.s32 1, %s1230_s18  }
 0x227   : > { %p12_p4 = scmp.ge.s32.totalorder %s15_s18, 4  }
 0x229   :  { %14 = sbr.rel (!%p12_p4) target bundleno = 1 (0x1), region = 76 }

// kernel: rgcn_forward.4
= control target key start
LH: loop header
LB: loop body
LE: loop exit
PB: predicated region body
PF: predicated region fallthrough
CT: control target
= control target key end

     0   :  { %s1295_s18 = smov 0   ;;  %s1537_s0 = inlined_call_operand.vmem [shape: bf16[128,32], index: 0, kind: input, shape index: {}]   ;;  %s1538_s1 = inlined_call_operand.vmem [shape: bf16[128,128], index: 1, kind: input, shape index: {}]   ;;  %s1539_s2 = inlined_call_operand.vmem [shape: bf16[128,3], index: 2, kind: input, shape index: {}]   ;;  %s1540_s3 = inlined_call_operand.vmem [shape: bf16[224,128], index: 3, kind: input, shape index: {}]   ;;  %s1541_s4 = inlined_call_operand.vmem [shape: bf16[3,128], index: 4, kind: input, shape index: {}]   ;;  %s1542_s5 = inlined_call_operand.vmem [shape: f32[128,128], index: 5, kind: output, shape index: {}]  }
   0x1 LB: > { %s1103_s19 = sadd.s32 4294967295, %s1256_s18   ;;  %p1107_p0 = scmp.ge.s32.totalorder %s1256_s18, 1  ;;  %s1256_s18 = sphi %s1295_s18, %s15_s18  }
   0x2   : > { %p210_p1 = scmp.lt.s32.totalorder %s1256_s18, 3 }
   0x4   : > { %p211_p2 = pnand %p1107_p0, %p210_p1 }
   0x5   : > { %s1108_s20 = sshll.u32 (!%p211_p2), %s1103_s19, 3  ;;  %v1258_v0 = vmov (!%p211_p2), 2   ;;  %v1259_v1 = vmov (!%p211_p2), 1   ;;  %v1260_v2 = vmov (!%p211_p2), 0   ;;  %v1228_v11 = vld [vmem:[%s1540_s3] sm:$0xff] (!%p211_p2)   ;;  %vm777_vm0 = vcmask (!%p211_p2), 1040384  }
   0x6   : > { %214 = sbr.rel (%p211_p2) target bundleno = 523 (0x20b), region = 40  ;;  %1219 = vset.pattern.permute.xlu1 (!%p211_p2), %v1258_v0  ;;  %1218 = vset.pattern.permute.xlu0 (!%p211_p2), %v1259_v1  ;;  %p249_p3 = scmp.lt.s32.totalorder (!%p211_p2), %s1108_s20, 15  ;;  %vm778_vm1 = vcmask (!%p211_p2), 1041408   ;;  %v1261_v13 = vmov (!%p211_p2), 65535   ;;  %vm764_vm2 = vcmask (!%p211_p2), 23552   ;;  %v1229_v15 = vld [vmem:[%s1540_s3 + $0x8] sm:$0xff] (!%p211_p2)   ;;  %v305_v33 = vlaneseq (!%p211_p2) }
   0x7   : > { %1175 = vmatprep.subr.bf16.mxu1 (!%p211_p2), %v1260_v2  ;;  %v779_v14 = vsel (!%p211_p2), %vm777_vm0, 4294967295, %v1261_v13  ;;  %v743_v16 = vld [vmem:[%s1541_s4] sm:$0x3] (!%p211_p2)  ;;  %v1230_v20 = vld [vmem:[%s1540_s3 + $0x10] sm:$0xff] (!%p211_p2)   ;;  %v1231_v21 = vld [vmem:[%s1540_s3 + $0x18] sm:$0xff] (!%p211_p2)   ;;  %s1264_s14 = smov (!%p211_p2), 32  }
   0x8   : > { %1189 = vmatpush1.bf16.msra.mxu1 (!%p211_p2), %v1228_v11  ;;  %v780_v17 = vsel (!%p211_p2), %vm778_vm1, %v779_v14, 0  ;;  %v1232_v22 = vld [vmem:[%s1540_s3 + $0x20] sm:$0xff] (!%p211_p2)   ;;  %v1233_v23 = vld [vmem:[%s1540_s3 + $0x28] sm:$0xff] (!%p211_p2)   ;;  %v1234_v24 = vld [vmem:[%s1540_s3 + $0x30] sm:$0xff] (!%p211_p2)   ;;  %v1262_v31 = vmov (!%p211_p2), 839922192  }
   0x9   : > { %1176 = vmatprep.subr.bf16.mxu1 (!%p211_p2), %v1260_v2  ;;  %v782_v18 = vand.u32 (!%p211_p2), %v780_v17, %v743_v16  ;;  %v1237_v25 = vld [vmem:[%s1540_s3 + $0x38] sm:$0xff] (!%p211_p2)   ;;  %v1238_v26 = vld [vmem:[%s1540_s3 + $0x40] sm:$0xff] (!%p211_p2)   ;;  %v1239_v27 = vld [vmem:[%s1540_s3 + $0x48] sm:$0xff] (!%p211_p2)   ;;  %v303_v32 = vunpack.c.l.s4 (!%p211_p2), %v1262_v31  ;;  %v306_v35 = vshrl.u32 (!%p211_p2), %v305_v33, 7  ;;  %vm693_vm3 = vcmask (!%p211_p2), 261120  }
   0xa   : > { %v1240_v28 = vld [vmem:[%s1540_s3 + $0x50] sm:$0xff] (!%p211_p2)   ;;  %v1241_v29 = vld [vmem:[%s1540_s3 + $0x58] sm:$0xff] (!%p211_p2)   ;;  %v1242_v30 = vld [vmem:[%s1540_s3 + $0x60] sm:$0xff] (!%p211_p2)   ;;  %vm706_vm4 = vcmask (!%p211_p2), 523264   ;;  %vm933_vm5 = vcmask (!%p211_p2), 785408  }
   0xb   : > { %1165 = vmatprep.subr.bf16.mxu0 (!%p211_p2), %v782_v18  ;;  %v304_v34 = vunpack.c.0.s8 (!%p211_p2), %v303_v32  ;;  %v1243_v36 = vld [vmem:[%s1540_s3 + $0x68] sm:$0xff] (!%p211_p2)  }
   0xc   : > { %1190 = vmatpush1.bf16.msra.mxu1 (!%p211_p2), %v1229_v15  ;;  %1166 = vmatpush3.bf16.msra.mxu0 (!%p211_p2), %v782_v18 }
   0xd   : > { %s1544_s20 = smov (!%p249_p3, %s1108_s20), 15  ;;  %1177 = vmatprep.subr.bf16.mxu1 %v1260_v2  ;;  %942 = vmatprep.subr.bf16.mxu0 %v1260_v2  ;;  %v1417_v37 = vsub.s32 %v304_v34, %v306_v35 }
   0xe   : > { %s1308_s21 = sshll.u32 %s1544_s20, 2  ;;  %s1115_s15 = sshll.u32 %s1544_s20, 3 }
   0xf   : > { %s264_s24 = scalar_lea.vmem %s1539_s2, %s1308_s21  ;;  %s1415_s10 = scalar_lea.vmem %s1538_s1, %s1308_s21 }
  0x10   : > { %v291_v3 = vld [vmem:[%s264_s24 + $0x8] sm:$0xf]  ;;  %v292_v4 = vld [vmem:[%s264_s24 + $0xc] sm:$0xf]  ;;  %v1314_v5 = vld [vmem:[%s264_s24 + $0x10] sm:$0xf]  ;;  %1191 = vmatpush1.bf16.msra.mxu1 %v1230_v20  ;;  %s1423_s13 = scalar_lea.vmem %s1537_s0, %s1308_s21  ;;  %s1524_s19 = scalar_lea.vmem %s1542_s5, %s1115_s15 }
  0x11   : > { %520 = vperm.xlu1 %1219, %v291_v3   ;;  %424 = vperm.xlu0 %1218, %v291_v3   ;;  %v1316_v6 = vld [vmem:[%s264_s24 + $0x14] sm:$0xf]  ;;  %v290_v7 = vld [vmem:[%s264_s24 + $0x4] sm:$0xf]  ;;  %v289_v8 = vld [vmem:[%s264_s24] sm:$0xf]  ;;  %v1133_v19 = vcombine.low %v291_v3, %v292_v4 }
  0x12   : > { %v1324_v9 = vld [vmem:[%s264_s24 + $0x18] sm:$0xf]  ;;  %v1326_v10 = vld [vmem:[%s264_s24 + $0x1c] sm:$0xf]  ;;  %v1132_v12 = vcombine.low %v289_v8, %v290_v7  ;;  %1178 = vmatprep.subr.bf16.mxu1 %v1260_v2  ;;  %v1428_v42 = vld [vmem:[%s1423_s13 + $0x8] sm:$0xf] }
  0x13   : > { %v1431_v44 = vld [vmem:[%s1423_s13 + $0xc] sm:$0xf]  ;;  %v1441_v57 = vld [vmem:[%s1423_s13 + $0x10] sm:$0xf]  ;;  %v1444_v58 = vld [vmem:[%s1423_s13 + $0x14] sm:$0xf]  ;;  %v1135_v14 = vcombine.low %v1324_v9, %v1326_v10 }
  0x14   : > { %1167 = vmatprep.mubr.msk.bf16.mxu0 %vm764_vm2, %v1132_v12  ;;  %1192 = vmatpush1.bf16.msra.mxu1 %v1231_v21  ;;  %s1263_s21 = smov 64   ;;  %v273_v13 = vld [vmem:[%s1423_s13] sm:$0xf] }
  0x15   : > { %531 = vperm.xlu1 %1219, %v292_v4   ;;  %435 = vperm.xlu0 %1218, %v292_v4  }
  0x16   : > { %1168 = vmatmul.mubr.msk.bf16.vlgmr.msra.gmra.mrb[0].mxu0 %vm764_vm2, %v1133_v19  ;;  %1179 = vmatprep.subr.bf16.mxu1 %v1260_v2 }
  0x17   : > { %943 = vmatpush1.bf16.msra.mxu0 %v1228_v11  ;;  %v274_v11 = vld [vmem:[%s1423_s13 + $0x4] sm:$0xf] }
  0x18   : > { %944 = vmatprep.subr.bf16.mxu0 %v1260_v2  ;;  %1193 = vmatpush1.bf16.msra.mxu1 %v1232_v22 }
  0x19   : > { %1220 = vset.pattern.permute.xlu1 %v1259_v1  ;;  %446 = vperm.xlu0 %1218, %v1314_v5  }
  0x1a   : > { %457 = vperm.xlu1 %1220, %v1316_v6   ;;  %1180 = vmatprep.subr.bf16.mxu1 %v1260_v2 }
  0x1b   : > { %945 = vmatpush1.bf16.msra.mxu0 %v1229_v15 }
  0x1c   : > { %946 = vmatprep.subr.bf16.mxu0 %v1260_v2  ;;  %1194 = vmatpush1.bf16.msra.mxu1 %v1233_v23 }
  0x1d   : > { %413 = vperm.xlu0 %1218, %v290_v7   ;;  %1181 = vmatprep.subr.bf16.mxu1 %v1260_v2 }
  0x1e   : > { %1221 = vset.pattern.permute.xlu1 %v1258_v0 }
  0x1f   : > { %553 = vperm.xlu1 %1221, %v1316_v6   ;;  %947 = vmatpush1.bf16.msra.mxu0 %v1230_v20 }
  0x20   : > { %948 = vmatprep.subr.bf16.mxu0 %v1260_v2  ;;  %1195 = vmatpush1.bf16.msra.mxu1 %v1234_v24 }
  0x21   : > { %1223 = vset.pattern.permute.xlu0 %v1258_v0  ;;  %1182 = vmatprep.subr.bf16.mxu1 %v1260_v2 }
  0x22   : > { %542 = vperm.xlu0 %1223, %v1314_v5  }
  0x23   : > { %1222 = vset.pattern.permute.xlu1 %v1259_v1  ;;  %949 = vmatpush1.bf16.msra.mxu0 %v1231_v21  ;;  %v1473_v21 = vld [vmem:[%s1423_s13 + $0x18] sm:$0xf] }
  0x24   : > { %402 = vperm.xlu1 %1222, %v289_v8   ;;  %950 = vmatprep.subr.bf16.mxu0 %v1260_v2 }
  0x25   : > { %1196 = vmatpush1.bf16.msra.mxu1 %v1237_v25 }
  0x26   : > { %498 = vperm.xlu0 %1223, %v289_v8   ;;  %1183 = vmatprep.subr.bf16.mxu1 %v1260_v2 }
  0x27   : > { %951 = vmatpush1.bf16.msra.mxu0 %v1232_v22 }
  0x28   : > { %468 = vperm.xlu1 %1222, %v1324_v9   ;;  %952 = vmatprep.subr.bf16.mxu0 %v1260_v2 }
  0x29   : > { %1197 = vmatpush1.bf16.msra.mxu1 %v1238_v26 }
  0x2a   : > { %575 = vperm.xlu0 %1223, %v1326_v10   ;;  %1184 = vmatprep.subr.bf16.mxu1 %v1260_v2 }
  0x2b   : > { %953 = vmatpush1.bf16.msra.mxu0 %v1233_v23  ;;  %v1476_v23 = vld [vmem:[%s1423_s13 + $0x1c] sm:$0xf] }
  0x2c   : > { %479 = vperm.xlu1 %1222, %v1326_v10   ;;  %954 = vmatprep.subr.bf16.mxu0 %v1260_v2 }
  0x2d   : > { %1198 = vmatpush1.bf16.msra.mxu1 %v1239_v27 }
  0x2e   : > { %1226 = vset.pattern.permute.xlu0 %v1260_v2  ;;  %1185 = vmatprep.subr.bf16.mxu1 %v1260_v2 }
  0x2f   : > { %335 = vperm.xlu0 %1226, %v292_v4   ;;  %955 = vmatpush1.bf16.msra.mxu0 %v1234_v24 }
  0x30   : > { %1224 = vset.pattern.permute.xlu1 %v1258_v0  ;;  %956 = vmatprep.subr.bf16.mxu0 %v1260_v2 }
  0x31   : > { %509 = vperm.xlu1 %1224, %v290_v7   ;;  %1199 = vmatpush1.bf16.msra.mxu1 %v1240_v28 }
  0x32   : > { %1186 = vmatprep.subr.bf16.mxu1 %v1260_v2 }
  0x33   : > { %299 = vperm.xlu0 %1226, %v289_v8   ;;  %957 = vmatpush1.bf16.msra.mxu0 %v1237_v25  ;;  %v1134_v8 = vcombine.low %v1314_v5, %v1316_v6 }
  0x34   : > { %958 = vmatprep.subr.bf16.mxu0 %v1260_v2 }
  0x35   : > { %564 = vperm.xlu1 %1224, %v1324_v9   ;;  %1200 = vmatpush1.bf16.msra.mxu1 %v1241_v29 }
  0x36   : > { %1187 = vmatprep.subr.bf16.mxu1 %v1260_v2  ;;  %1171 = vmatprep.mubr.msk.bf16.mxu0 %vm764_vm2, %v1134_v8 }
  0x37   : > { %959 = vmatpush1.bf16.msra.mxu0 %v1238_v26 }
  0x38   : > { %960 = vmatprep.subr.bf16.mxu0 %v1260_v2  ;;  %1172 = vmatmul.mubr.msk.bf16.gmra.mrb[4].mxu0 %vm764_vm2, %v1135_v14 }
  0x39   : > { %1225 = vset.pattern.permute.xlu1 %v1260_v2  ;;  %1201 = vmatpush1.bf16.msra.mxu1 %v1242_v30 }
  0x3a   : > { %323 = vperm.xlu1 %1225, %v291_v3   ;;  %1188 = vmatprep.subr.bf16.mxu1 %v1260_v2 }
  0x3b   : > { %961 = vmatpush1.bf16.msra.mxu0 %v1239_v27 }
  0x3c   : > { %962 = vmatprep.subr.bf16.mxu0 %v1260_v2 }
  0x3d   : > { %1202 = vmatpush1.bf16.msra.mxu1 %v1243_v36 }
  0x3e   : > { %347 = vperm.xlu1 %1225, %v1314_v5  }
  0x3f   : > { %963 = vmatpush1.bf16.msra.mxu0 %v1240_v28 }
  0x40   : > { %964 = vmatprep.subr.bf16.mxu0 %v1260_v2 }
  0x42   : > { %359 = vperm.xlu1 %1225, %v1316_v6  }
  0x43   : > { %965 = vmatpush1.bf16.msra.mxu0 %v1241_v29 }
  0x44   : > { %966 = vmatprep.subr.bf16.mxu0 %v1260_v2 }
  0x46   : > { %311 = vperm.xlu1 %1225, %v290_v7  }
  0x47   : > { %967 = vmatpush1.bf16.msra.mxu0 %v1242_v30 }
  0x48   : > { %968 = vmatprep.subr.bf16.mxu0 %v1260_v2 }
  0x4b   : > { %969 = vmatpush1.bf16.msra.mxu0 %v1243_v36 }
  0x90   : > { %v521_v38 = vpop.permute.xlu1 %520  ;;  %v425_v39 = vpop.permute.xlu0 %424 }
  0x91   : > { %v529_v40 = vrot.slane %v521_v38, %v1417_v37  ;;  %v433_v41 = vrot.slane %v425_v39, %v1417_v37 }
  0x93   : > { %v587_v48 = vmul.bf16 %v529_v40, %v1428_v42  ;;  %v491_v49 = vmul.bf16 %v433_v41, %v1428_v42 }
  0x94   : > { %v532_v43 = vpop.permute.xlu1 %531  ;;  %v436_v45 = vpop.permute.xlu0 %435 }
  0x95   : > { %v540_v46 = vrot.slane %v532_v43, %v1417_v37  ;;  %v444_v47 = vrot.slane %v436_v45, %v1417_v37 }
  0x97   : > { %v588_v50 = vmul.bf16 %v540_v46, %v1431_v44  ;;  %v492_v51 = vmul.bf16 %v444_v47, %v1431_v44 }
  0x98   : > { %v447_v52 = vpop.permute.xlu0 %446 }
  0x99   : > { %v455_v53 = vrot.slane %v447_v52, %v1417_v37  ;;  %v458_v54 = vpop.permute.xlu1 %457  ;;  %v1129_v55 = vcombine.low %v587_v48, %v588_v50  ;;  %v1125_v56 = vcombine.low %v491_v49, %v492_v51 }
  0x9a   : > { %v466_v59 = vrot.slane %v458_v54, %v1417_v37 }
  0x9b   : > { %687 = vrot.lane.b32.xlu1 %v1129_v55, %s1263_s21  ;;  %659 = vrot.lane.b32.xlu0 %v1125_v56, %s1264_s14  ;;  %v493_v61 = vmul.bf16 %v455_v53, %v1441_v57 }
  0x9c   : > { %v414_v60 = vpop.permute.xlu0 %413  ;;  %v494_v62 = vmul.bf16 %v466_v59, %v1444_v58 }
  0x9d   : > { %v422_v4 = vrot.slane %v414_v60, %v1417_v37 }
  0x9e   : > { %v554_v63 = vpop.permute.xlu1 %553  ;;  %v1126_v3 = vcombine.low %v493_v61, %v494_v62 }
  0x9f   : > { %383 = vperm.xlu1 %1225, %v1326_v10   ;;  %371 = vperm.xlu0 %1226, %v1324_v9   ;;  %v562_v1 = vrot.slane %v554_v63, %v1417_v37  ;;  %v490_v5 = vmul.bf16 %v422_v4, %v274_v11 }
  0xa1   : > { %v543_v2 = vpop.permute.xlu0 %542  ;;  %v590_v15 = vmul.bf16 %v562_v1, %v1444_v58 }
  0xa2   : > { %v551_v7 = vrot.slane %v543_v2, %v1417_v37 }
  0xa3   : > { %v403_v12 = vpop.permute.xlu1 %402  ;;  %661 = vrot.lane.b32.xlu0 %v1126_v3, %s1264_s14 }
  0xa4   : > { %v589_v16 = vmul.bf16 %v551_v7, %v1441_v57  ;;  %v411_v17 = vrot.slane %v403_v12, %v1417_v37  ;;  %1227 = vset.pattern.permute.xlu0 %v1258_v0 }
  0xa5   : > { %v499_v20 = vpop.permute.xlu0 %498 }
  0xa6   : > { %v489_v6 = vmul.bf16 %v411_v17, %v273_v13  ;;  %v1130_v18 = vcombine.low %v589_v16, %v590_v15  ;;  %v507_v26 = vrot.slane %v499_v20, %v1417_v37  ;;  %v1247_v16 = vld [vmem:[%s1415_s10 + $0x10] sm:$0xff]  }
  0xa7   : > { %v469_v19 = vpop.permute.xlu1 %468 }
  0xa8   : > { %689 = vrot.lane.b32.xlu1 %v1130_v18, %s1263_s21  ;;  %v1124_v9 = vcombine.low %v489_v6, %v490_v5  ;;  %v477_v10 = vrot.slane %v469_v19, %v1417_v37  ;;  %v585_v31 = vmul.bf16 %v507_v26, %v273_v13  ;;  %v1249_v26 = vld [vmem:[%s1415_s10 + $0x18] sm:$0xff]  }
  0xa9   : > { %v576_v27 = vpop.permute.xlu0 %575 }
  0xaa   : > { %657 = vrot.lane.b32.xlu0 %v1124_v9, %s1264_s14  ;;  %v495_v24 = vmul.bf16 %v477_v10, %v1473_v21  ;;  %v584_v32 = vrot.slane %v576_v27, %v1417_v37 }
  0xab   : > { %v480_v22 = vpop.permute.xlu1 %479 }
  0xac   : > { %v488_v0 = vrot.slane %v480_v22, %v1417_v37  ;;  %v592_v40 = vmul.bf16 %v584_v32, %v1476_v23  ;;  %v1248_v22 = vld [vmem:[%s1415_s10] sm:$0xff]  }
  0xae   : > { %v496_v25 = vmul.bf16 %v488_v0, %v1476_v23  ;;  %v336_v38 = vpop.permute.xlu0 %335 }
  0xaf   : > { %v344_v39 = vrot.slane %v336_v38, %v1417_v37 }
  0xb0   : > { %v510_v28 = vpop.permute.xlu1 %509  ;;  %v1127_v29 = vcombine.low %v495_v24, %v496_v25 }
  0xb1   : > { %v518_v30 = vrot.slane %v510_v28, %v1417_v37  ;;  %v396_v47 = vmul.bf16 %v344_v39, %v1431_v44 }
  0xb2   : > { %663 = vrot.lane.b32.xlu1 %v1127_v29, %s1264_s14  ;;  %v300_v53 = vpop.permute.xlu0 %299 }
  0xb3   : > { %v586_v33 = vmul.bf16 %v518_v30, %v274_v11  ;;  %v308_v56 = vrot.slane %v300_v53, %v1417_v37 }
  0xb4   : > { %v565_v34 = vpop.permute.xlu1 %564 }
  0xb5   : > { %v573_v35 = vrot.slane %v565_v34, %v1417_v37  ;;  %v1128_v36 = vcombine.low %v585_v31, %v586_v33  ;;  %v393_v61 = vmul.bf16 %v308_v56, %v273_v13 }
  0xb7   : > { %v591_v41 = vmul.bf16 %v573_v35, %v1473_v21  ;;  %685 = vrot.lane.b32.xlu0 %v1128_v36, %s1263_s21 }
  0xb9   : > { %v1131_v43 = vcombine.low %v591_v41, %v592_v40  ;;  %v324_v45 = vpop.permute.xlu1 %323 }
  0xba   : > { %v332_v46 = vrot.slane %v324_v45, %v1417_v37 }
  0xbb   : > { %691 = vrot.lane.b32.xlu1 %v1131_v43, %s1263_s21 }
  0xbc   : > { %v395_v48 = vmul.bf16 %v332_v46, %v1428_v42 }
  0xbd   : > { %v348_v49 = vpop.permute.xlu1 %347 }
  0xbe   : > { %v356_v50 = vrot.slane %v348_v49, %v1417_v37  ;;  %v1121_v51 = vcombine.low %v395_v48, %v396_v47 }
  0xc0   : > { %v397_v54 = vmul.bf16 %v356_v50, %v1441_v57  ;;  %v1244_v57 = vld [vmem:[%s1415_s10 + $0x8] sm:$0xff]  }
  0xc1   : > { %v360_v52 = vpop.permute.xlu1 %359 }
  0xc2   : > { %v368_v55 = vrot.slane %v360_v52, %v1417_v37 }
  0xc4   : > { %v398_v59 = vmul.bf16 %v368_v55, %v1444_v58 }
  0xc5   : > { %v312_v44 = vpop.permute.xlu1 %311 }
  0xc6   : > { %v1122_v60 = vcombine.low %v397_v54, %v398_v59  ;;  %v320_v42 = vrot.slane %v312_v44, %v1417_v37 }
  0xc8   : > { %v394_v62 = vmul.bf16 %v320_v42, %v274_v11 }
  0xca   : > { %v1120_v63 = vcombine.low %v393_v61, %v394_v62 }
  0xe9   : > { %v1169_v58 = vpop.f32.mrb[0].mxu0 }
  0xea   : > { %v818_v7 = vpop.f32.mrb[1].mxu0 }
  0xeb   : > { %v1170_v8 = vpop.f32.mrb[2].mxu0 }
  0xec   : > { %v821_v12 = vpop.f32.mrb[3].mxu0 }
 0x10d   : > { %v688_v1 = vpop.permute.xlu1 %687  ;;  %v660_v2 = vpop.permute.xlu0 %659 }
 0x10e   : > { %v699_v3 = vsel %vm693_vm3, %v1121_v51, %v660_v2 }
 0x10f   : > { %v710_v4 = vsel %vm706_vm4, %v699_v3, %v688_v1 }
 0x110   : > { %1155 = vmatprep.mubr.msk.bf16.mxu1 %vm933_vm5, %v710_v4 }
 0x111   : > { %983 = vmatmul.mubr.bf16.vlgmr.msra.gmra.mrb[0].mxu1 %v1244_v57 }
 0x11e   : > { %v384_v11 = vpop.permute.xlu1 %383  ;;  %v372_v13 = vpop.permute.xlu0 %371 }
 0x11f   : > { %v392_v17 = vrot.slane %v384_v11, %v1417_v37  ;;  %v380_v5 = vrot.slane %v372_v13, %v1417_v37 }
 0x121   : > { %v400_v9 = vmul.bf16 %v392_v17, %v1476_v23  ;;  %v399_v10 = vmul.bf16 %v380_v5, %v1473_v21  ;;  %v1173_v21 = vpop.f32.mrb[4].mxu0 }
 0x122   : > { %v690_v14 = vpop.permute.xlu1 %689  ;;  %v662_v15 = vpop.permute.xlu0 %661 }
 0x123   : > { %v702_v6 = vsel %vm693_vm3, %v1122_v60, %v662_v15  ;;  %v1123_v25 = vcombine.low %v399_v10, %v400_v9  ;;  %v834_v29 = vpop.f32.mrb[5].mxu0 }
 0x124   : > { %v712_v18 = vsel %vm706_vm4, %v702_v6, %v690_v14  ;;  %v1174_v30 = vpop.f32.mrb[6].mxu0 }
 0x125   : > { %1156 = vmatprep.mubr.msk.bf16.mxu1 %vm933_vm5, %v712_v18  ;;  %v837_v31 = vpop.f32.mrb[7].mxu0 }
 0x126   : > { %991 = vmatmul.mubr.bf16.gmra.mrb[4].mxu1 %v1247_v16  ;;  %v658_v19 = vpop.permute.xlu0 %657  ;;  %v664_v20 = vpop.permute.xlu1 %663 }
 0x127   : > { %v696_v0 = vsel %vm693_vm3, %v1120_v63, %v658_v19  ;;  %v705_v27 = vsel %vm693_vm3, %v1123_v25, %v664_v20 }
 0x12a   : > { %v686_v24 = vpop.permute.xlu0 %685 }
 0x12b   : > { %v708_v37 = vsel %vm706_vm4, %v696_v0, %v686_v24 }
 0x12c   : > { %1154 = vmatprep.mubr.msk.bf16.mxu0 %vm933_vm5, %v708_v37 }
 0x12d   : > { %v692_v28 = vpop.permute.xlu1 %691  ;;  %975 = vmatmul.mubr.bf16.vlgmr.msra.gmra.mrb[8].mxu0 %v1248_v22 }
 0x12e   : > { %v714_v23 = vsel %vm706_vm4, %v705_v27, %v692_v28 }
 0x12f   : > { %1157 = vmatprep.mubr.msk.bf16.mxu1 %vm933_vm5, %v714_v23 }
 0x130   : > { %999 = vmatmul.mubr.bf16.gmra.mrb[8].mxu1 %v1249_v26 }
 0x1e4   : > { %v984_v32 = vpop.f32.mrb[0].mxu1 }
 0x1e5   : > { %v985_v33 = vadd.f32 %v1169_v58, %v984_v32  ;;  %v986_v34 = vpop.f32.mrb[1].mxu1 }
 0x1e6   : > { %v987_v35 = vpop.f32.mrb[2].mxu1 }
 0x1e7   : > { %v1009_v36 = vmax.f32 %v985_v33, 0.0  ;;  %v988_v38 = vadd.f32 %v1170_v8, %v987_v35  ;;  %v989_v39 = vpop.f32.mrb[3].mxu1 }
 0x1e9   : > { %1017 = vst [vmem:[%s1524_s19 + $0x10] sm:$0xff] %v1009_v36  ;;  %v1010_v40 = vmax.f32 %v988_v38, 0.0 }
 0x1eb   : > { %1018 = vst [vmem:[%s1524_s19 + $0x18] sm:$0xff] %v1010_v40 }
 0x1f9   : > { %v992_v41 = vpop.f32.mrb[4].mxu1 }
 0x1fa   : > { %v993_v43 = vadd.f32 %v992_v41, %v834_v29  ;;  %v994_v45 = vpop.f32.mrb[5].mxu1 }
 0x1fb   : > { %v995_v46 = vpop.f32.mrb[6].mxu1 }
 0x1fc   : > { %v1011_v47 = vmax.f32 %v993_v43, 0.0  ;;  %v996_v48 = vadd.f32 %v995_v46, %v837_v31  ;;  %v997_v49 = vpop.f32.mrb[7].mxu1 }
 0x1fe   : > { %1019 = vst [vmem:[%s1524_s19 + $0x20] sm:$0xff] %v1011_v47  ;;  %v1012_v50 = vmax.f32 %v996_v48, 0.0 }
 0x200   : > { %1020 = vst [vmem:[%s1524_s19 + $0x28] sm:$0xff] %v1012_v50  ;;  %v976_v51 = vpop.f32.mrb[8].mxu0 }
 0x201   : > { %v977_v52 = vadd.f32 %v976_v51, %v818_v7  ;;  %v978_v53 = vpop.f32.mrb[9].mxu0 }
 0x202   : > { %v979_v54 = vpop.f32.mrb[10].mxu0 }
 0x203   : > { %v1007_v55 = vmax.f32 %v977_v52, 0.0  ;;  %v980_v56 = vadd.f32 %v979_v54, %v821_v12  ;;  %v981_v59 = vpop.f32.mrb[11].mxu0  ;;  %v1000_v44 = vpop.f32.mrb[8].mxu1 }
 0x204   : > { %v1001_v60 = vadd.f32 %v1173_v21, %v1000_v44  ;;  %v1002_v61 = vpop.f32.mrb[9].mxu1 }
 0x205   : > { %1015 = vst [vmem:[%s1524_s19] sm:$0xff] %v1007_v55  ;;  %v1008_v42 = vmax.f32 %v980_v56, 0.0  ;;  %v1003_v62 = vpop.f32.mrb[10].mxu1 }
 0x206   : > { %v1013_v63 = vmax.f32 %v1001_v60, 0.0  ;;  %v1004_v1 = vadd.f32 %v1174_v30, %v1003_v62  ;;  %v1005_v2 = vpop.f32.mrb[11].mxu1 }
 0x207   : > { %1016 = vst [vmem:[%s1524_s19 + $0x8] sm:$0xff] %v1008_v42 }
 0x208   : > { %1021 = vst [vmem:[%s1524_s19 + $0x30] sm:$0xff] %v1013_v63  ;;  %v1014_v57 = vmax.f32 %v1004_v1, 0.0 }
 0x20a   : > { %1022 = vst [vmem:[%s1524_s19 + $0x38] sm:$0xff] %v1014_v57 }
 0x20b PF: > { %s15_s18 = sadd.s32 1, %s1256_s18  }
 0x20c   : > { %p12_p4 = scmp.ge.s32.totalorder %s15_s18, 4  }
 0x20e   :  { %14 = sbr.rel (!%p12_p4) target bundleno = 1 (0x1), region = 76 }

// kernel: rgcn_forward.5
= control target key start
LH: loop header
LB: loop body
LE: loop exit
PB: predicated region body
PF: predicated region fallthrough
CT: control target
= control target key end

     0   :  { %s1418_s18 = smov 0   ;;  %s1742_s0 = inlined_call_operand.vmem [shape: bf16[128,32], index: 0, kind: input, shape index: {}]   ;;  %s1743_s1 = inlined_call_operand.vmem [shape: bf16[128,128], index: 1, kind: input, shape index: {}]   ;;  %s1744_s2 = inlined_call_operand.vmem [shape: bf16[128,3], index: 2, kind: input, shape index: {}]   ;;  %s1745_s3 = inlined_call_operand.vmem [shape: bf16[224,128], index: 3, kind: input, shape index: {}]   ;;  %s1746_s4 = inlined_call_operand.vmem [shape: bf16[3,128], index: 4, kind: input, shape index: {}]   ;;  %s1747_s5 = inlined_call_operand.vmem [shape: f32[128,128], index: 5, kind: output, shape index: {}]  }
   0x1 LB: > { %s1194_s19 = sadd.s32 4294967295, %s1379_s18   ;;  %p1198_p0 = scmp.ge.s32.totalorder %s1379_s18, 1  ;;  %s1379_s18 = sphi %s1418_s18, %s15_s18  }
   0x2   : > { %p210_p1 = scmp.lt.s32.totalorder %s1379_s18, 3 }
   0x4   : > { %p211_p2 = pnand %p1198_p0, %p210_p1 }
   0x5   : > { %s1199_s20 = sshll.u32 (!%p211_p2), %s1194_s19, 3  ;;  %v1381_v0 = vmov (!%p211_p2), 2   ;;  %v1382_v1 = vmov (!%p211_p2), 1   ;;  %v1383_v2 = vmov (!%p211_p2), 0   ;;  %v1319_v11 = vld [vmem:[%s1745_s3] sm:$0xff] (!%p211_p2)   ;;  %vm777_vm0 = vcmask (!%p211_p2), 1040384  }
   0x6   : > { %214 = sbr.rel (%p211_p2) target bundleno = 849 (0x351), region = 40  ;;  %1310 = vset.pattern.permute.xlu1 (!%p211_p2), %v1381_v0  ;;  %1309 = vset.pattern.permute.xlu0 (!%p211_p2), %v1382_v1  ;;  %p249_p3 = scmp.lt.s32.totalorder (!%p211_p2), %s1199_s20, 15  ;;  %vm778_vm1 = vcmask (!%p211_p2), 1041408   ;;  %v1384_v13 = vmov (!%p211_p2), 65535   ;;  %vm764_vm2 = vcmask (!%p211_p2), 23552   ;;  %v1320_v15 = vld [vmem:[%s1745_s3 + $0x8] sm:$0xff] (!%p211_p2)   ;;  %v305_v33 = vlaneseq (!%p211_p2) }
   0x7   : > { %1266 = vmatprep.subr.bf16.mxu1 (!%p211_p2), %v1383_v2  ;;  %v779_v14 = vsel (!%p211_p2), %vm777_vm0, 4294967295, %v1384_v13  ;;  %v743_v16 = vld [vmem:[%s1746_s4] sm:$0x3] (!%p211_p2)  ;;  %v1321_v20 = vld [vmem:[%s1745_s3 + $0x10] sm:$0xff] (!%p211_p2)   ;;  %v1322_v21 = vld [vmem:[%s1745_s3 + $0x18] sm:$0xff] (!%p211_p2)   ;;  %s1387_s14 = smov (!%p211_p2), 32  }
   0x8   : > { %1280 = vmatpush1.bf16.msra.mxu1 (!%p211_p2), %v1319_v11  ;;  %v780_v17 = vsel (!%p211_p2), %vm778_vm1, %v779_v14, 0  ;;  %v1323_v22 = vld [vmem:[%s1745_s3 + $0x20] sm:$0xff] (!%p211_p2)   ;;  %v1324_v23 = vld [vmem:[%s1745_s3 + $0x28] sm:$0xff] (!%p211_p2)   ;;  %v1326_v24 = vld [vmem:[%s1745_s3 + $0x30] sm:$0xff] (!%p211_p2)   ;;  %v1385_v31 = vmov (!%p211_p2), 839922192  }
   0x9   : > { %1267 = vmatprep.subr.bf16.mxu1 (!%p211_p2), %v1383_v2  ;;  %v782_v18 = vand.u32 (!%p211_p2), %v780_v17, %v743_v16  ;;  %v1328_v25 = vld [vmem:[%s1745_s3 + $0x38] sm:$0xff] (!%p211_p2)   ;;  %v1329_v26 = vld [vmem:[%s1745_s3 + $0x40] sm:$0xff] (!%p211_p2)   ;;  %v1330_v27 = vld [vmem:[%s1745_s3 + $0x48] sm:$0xff] (!%p211_p2)   ;;  %v303_v32 = vunpack.c.l.s4 (!%p211_p2), %v1385_v31  ;;  %v306_v35 = vshrl.u32 (!%p211_p2), %v305_v33, 7  ;;  %vm693_vm3 = vcmask (!%p211_p2), 261120  }
   0xa   : > { %v1331_v28 = vld [vmem:[%s1745_s3 + $0x50] sm:$0xff] (!%p211_p2)   ;;  %v1332_v29 = vld [vmem:[%s1745_s3 + $0x58] sm:$0xff] (!%p211_p2)   ;;  %v1333_v30 = vld [vmem:[%s1745_s3 + $0x60] sm:$0xff] (!%p211_p2)   ;;  %vm706_vm4 = vcmask (!%p211_p2), 523264   ;;  %vm933_vm5 = vcmask (!%p211_p2), 785408  }
   0xb   : > { %1256 = vmatprep.subr.bf16.mxu0 (!%p211_p2), %v782_v18  ;;  %v304_v34 = vunpack.c.0.s8 (!%p211_p2), %v303_v32  ;;  %v1334_v36 = vld [vmem:[%s1745_s3 + $0x68] sm:$0xff] (!%p211_p2)  }
   0xc   : > { %1281 = vmatpush1.bf16.msra.mxu1 (!%p211_p2), %v1320_v15  ;;  %1257 = vmatpush3.bf16.msra.mxu0 (!%p211_p2), %v782_v18 }
   0xd   : > { %s1749_s20 = smov (!%p249_p3, %s1199_s20), 15  ;;  %1268 = vmatprep.subr.bf16.mxu1 %v1383_v2  ;;  %942 = vmatprep.subr.bf16.mxu0 %v1383_v2  ;;  %v1541_v37 = vsub.s32 %v304_v34, %v306_v35 }
   0xe   : > { %s1431_s21 = sshll.u32 %s1749_s20, 2  ;;  %s1206_s15 = sshll.u32 %s1749_s20, 3 }
   0xf   : > { %s264_s24 = scalar_lea.vmem %s1744_s2, %s1431_s21  ;;  %s1539_s10 = scalar_lea.vmem %s1743_s1, %s1431_s21 }
  0x10   : > { %v291_v3 = vld [vmem:[%s264_s24 + $0x8] sm:$0xf]  ;;  %v292_v4 = vld [vmem:[%s264_s24 + $0xc] sm:$0xf]  ;;  %v1437_v5 = vld [vmem:[%s264_s24 + $0x10] sm:$0xf]  ;;  %1282 = vmatpush1.bf16.msra.mxu1 %v1321_v20  ;;  %s1547_s13 = scalar_lea.vmem %s1742_s0, %s1431_s21  ;;  %s1714_s19 = scalar_lea.vmem %s1747_s5, %s1206_s15 }
  0x11   : > { %520 = vperm.xlu1 %1310, %v291_v3   ;;  %424 = vperm.xlu0 %1309, %v291_v3   ;;  %v1439_v6 = vld [vmem:[%s264_s24 + $0x14] sm:$0xf]  ;;  %v290_v7 = vld [vmem:[%s264_s24 + $0x4] sm:$0xf]  ;;  %v289_v8 = vld [vmem:[%s264_s24] sm:$0xf]  ;;  %v1224_v19 = vcombine.low %v291_v3, %v292_v4 }
  0x12   : > { %v1447_v9 = vld [vmem:[%s264_s24 + $0x18] sm:$0xf]  ;;  %v1450_v10 = vld [vmem:[%s264_s24 + $0x1c] sm:$0xf]  ;;  %v1223_v12 = vcombine.low %v289_v8, %v290_v7  ;;  %1269 = vmatprep.subr.bf16.mxu1 %v1383_v2  ;;  %v1552_v42 = vld [vmem:[%s1547_s13 + $0x8] sm:$0xf] }
  0x13   : > { %v1555_v44 = vld [vmem:[%s1547_s13 + $0xc] sm:$0xf]  ;;  %v1565_v57 = vld [vmem:[%s1547_s13 + $0x10] sm:$0xf]  ;;  %v1568_v58 = vld [vmem:[%s1547_s13 + $0x14] sm:$0xf] }
  0x14   : > { %1258 = vmatprep.mubr.msk.bf16.mxu0 %vm764_vm2, %v1223_v12  ;;  %1283 = vmatpush1.bf16.msra.mxu1 %v1322_v21  ;;  %s1386_s21 = smov 64   ;;  %v274_v12 = vld [vmem:[%s1547_s13 + $0x4] sm:$0xf]  ;;  %v273_v14 = vld [vmem:[%s1547_s13] sm:$0xf] }
  0x15   : > { %531 = vperm.xlu1 %1310, %v292_v4   ;;  %435 = vperm.xlu0 %1309, %v292_v4  }
  0x16   : > { %1259 = vmatmul.mubr.msk.bf16.vlgmr.msra.gmra.mrb[0].mxu0 %vm764_vm2, %v1224_v19  ;;  %1270 = vmatprep.subr.bf16.mxu1 %v1383_v2 }
  0x17   : > { %943 = vmatpush1.bf16.msra.mxu0 %v1319_v11 }
  0x18   : > { %944 = vmatprep.subr.bf16.mxu0 %v1383_v2  ;;  %1284 = vmatpush1.bf16.msra.mxu1 %v1323_v22 }
  0x19   : > { %1311 = vset.pattern.permute.xlu1 %v1382_v1  ;;  %446 = vperm.xlu0 %1309, %v1437_v5  }
  0x1a   : > { %457 = vperm.xlu1 %1311, %v1439_v6   ;;  %1271 = vmatprep.subr.bf16.mxu1 %v1383_v2 }
  0x1b   : > { %945 = vmatpush1.bf16.msra.mxu0 %v1320_v15 }
  0x1c   : > { %946 = vmatprep.subr.bf16.mxu0 %v1383_v2  ;;  %1285 = vmatpush1.bf16.msra.mxu1 %v1324_v23 }
  0x1d   : > { %413 = vperm.xlu0 %1309, %v290_v7   ;;  %1272 = vmatprep.subr.bf16.mxu1 %v1383_v2 }
  0x1e   : > { %1312 = vset.pattern.permute.xlu1 %v1381_v0 }
  0x1f   : > { %553 = vperm.xlu1 %1312, %v1439_v6   ;;  %947 = vmatpush1.bf16.msra.mxu0 %v1321_v20 }
  0x20   : > { %948 = vmatprep.subr.bf16.mxu0 %v1383_v2  ;;  %1286 = vmatpush1.bf16.msra.mxu1 %v1326_v24 }
  0x21   : > { %1314 = vset.pattern.permute.xlu0 %v1381_v0  ;;  %1273 = vmatprep.subr.bf16.mxu1 %v1383_v2 }
  0x22   : > { %542 = vperm.xlu0 %1314, %v1437_v5  }
  0x23   : > { %1313 = vset.pattern.permute.xlu1 %v1382_v1  ;;  %949 = vmatpush1.bf16.msra.mxu0 %v1322_v21  ;;  %v1225_v1 = vcombine.low %v1437_v5, %v1439_v6  ;;  %v1597_v21 = vld [vmem:[%s1547_s13 + $0x18] sm:$0xf] }
  0x24   : > { %402 = vperm.xlu1 %1313, %v289_v8   ;;  %950 = vmatprep.subr.bf16.mxu0 %v1383_v2 }
  0x25   : > { %1287 = vmatpush1.bf16.msra.mxu1 %v1328_v25  ;;  %1262 = vmatprep.mubr.msk.bf16.mxu0 %vm764_vm2, %v1225_v1 }
  0x26   : > { %498 = vperm.xlu0 %1314, %v289_v8   ;;  %1274 = vmatprep.subr.bf16.mxu1 %v1383_v2 }
  0x27   : > { %951 = vmatpush1.bf16.msra.mxu0 %v1323_v22 }
  0x28   : > { %468 = vperm.xlu1 %1313, %v1447_v9   ;;  %952 = vmatprep.subr.bf16.mxu0 %v1383_v2 }
  0x29   : > { %1288 = vmatpush1.bf16.msra.mxu1 %v1329_v26 }
  0x2a   : > { %575 = vperm.xlu0 %1314, %v1450_v10   ;;  %1275 = vmatprep.subr.bf16.mxu1 %v1383_v2 }
  0x2b   : > { %953 = vmatpush1.bf16.msra.mxu0 %v1324_v23  ;;  %v1600_v23 = vld [vmem:[%s1547_s13 + $0x1c] sm:$0xf] }
  0x2c   : > { %479 = vperm.xlu1 %1313, %v1450_v10   ;;  %954 = vmatprep.subr.bf16.mxu0 %v1383_v2 }
  0x2d   : > { %1289 = vmatpush1.bf16.msra.mxu1 %v1330_v27 }
  0x2e   : > { %1317 = vset.pattern.permute.xlu0 %v1383_v2  ;;  %1276 = vmatprep.subr.bf16.mxu1 %v1383_v2 }
  0x2f   : > { %335 = vperm.xlu0 %1317, %v292_v4   ;;  %955 = vmatpush1.bf16.msra.mxu0 %v1326_v24 }
  0x30   : > { %1315 = vset.pattern.permute.xlu1 %v1381_v0  ;;  %956 = vmatprep.subr.bf16.mxu0 %v1383_v2 }
  0x31   : > { %509 = vperm.xlu1 %1315, %v290_v7   ;;  %1290 = vmatpush1.bf16.msra.mxu1 %v1331_v28 }
  0x32   : > { %1277 = vmatprep.subr.bf16.mxu1 %v1383_v2 }
  0x33   : > { %299 = vperm.xlu0 %1317, %v289_v8   ;;  %957 = vmatpush1.bf16.msra.mxu0 %v1328_v25 }
  0x34   : > { %958 = vmatprep.subr.bf16.mxu0 %v1383_v2 }
  0x35   : > { %564 = vperm.xlu1 %1315, %v1447_v9   ;;  %1291 = vmatpush1.bf16.msra.mxu1 %v1332_v29 }
  0x36   : > { %1278 = vmatprep.subr.bf16.mxu1 %v1383_v2 }
  0x37   : > { %959 = vmatpush1.bf16.msra.mxu0 %v1329_v26 }
  0x38   : > { %960 = vmatprep.subr.bf16.mxu0 %v1383_v2 }
  0x39   : > { %1316 = vset.pattern.permute.xlu1 %v1383_v2  ;;  %1292 = vmatpush1.bf16.msra.mxu1 %v1333_v30 }
  0x3a   : > { %323 = vperm.xlu1 %1316, %v291_v3   ;;  %1279 = vmatprep.subr.bf16.mxu1 %v1383_v2  ;;  %v1226_v3 = vcombine.low %v1447_v9, %v1450_v10 }
  0x3b   : > { %961 = vmatpush1.bf16.msra.mxu0 %v1330_v27 }
  0x3c   : > { %962 = vmatprep.subr.bf16.mxu0 %v1383_v2  ;;  %1263 = vmatmul.mubr.msk.bf16.gmra.mrb[4].mxu0 %vm764_vm2, %v1226_v3 }
  0x3d   : > { %1293 = vmatpush1.bf16.msra.mxu1 %v1334_v36 }
  0x3e   : > { %347 = vperm.xlu1 %1316, %v1437_v5  }
  0x3f   : > { %963 = vmatpush1.bf16.msra.mxu0 %v1331_v28 }
  0x40   : > { %964 = vmatprep.subr.bf16.mxu0 %v1383_v2 }
  0x42   : > { %359 = vperm.xlu1 %1316, %v1439_v6  }
  0x43   : > { %965 = vmatpush1.bf16.msra.mxu0 %v1332_v29 }
  0x44   : > { %966 = vmatprep.subr.bf16.mxu0 %v1383_v2 }
  0x46   : > { %311 = vperm.xlu1 %1316, %v290_v7  }
  0x47   : > { %967 = vmatpush1.bf16.msra.mxu0 %v1333_v30 }
  0x48   : > { %968 = vmatprep.subr.bf16.mxu0 %v1383_v2 }
  0x4b   : > { %969 = vmatpush1.bf16.msra.mxu0 %v1334_v36 }
  0x90   : > { %v521_v38 = vpop.permute.xlu1 %520  ;;  %v425_v39 = vpop.permute.xlu0 %424 }
  0x91   : > { %v529_v40 = vrot.slane %v521_v38, %v1541_v37  ;;  %v433_v41 = vrot.slane %v425_v39, %v1541_v37 }
  0x93   : > { %v587_v48 = vmul.bf16 %v529_v40, %v1552_v42  ;;  %v491_v49 = vmul.bf16 %v433_v41, %v1552_v42 }
  0x94   : > { %v532_v43 = vpop.permute.xlu1 %531  ;;  %v436_v45 = vpop.permute.xlu0 %435 }
  0x95   : > { %v540_v46 = vrot.slane %v532_v43, %v1541_v37  ;;  %v444_v47 = vrot.slane %v436_v45, %v1541_v37 }
  0x97   : > { %v588_v50 = vmul.bf16 %v540_v46, %v1555_v44  ;;  %v492_v51 = vmul.bf16 %v444_v47, %v1555_v44 }
  0x98   : > { %v447_v52 = vpop.permute.xlu0 %446 }
  0x99   : > { %v455_v53 = vrot.slane %v447_v52, %v1541_v37  ;;  %v458_v54 = vpop.permute.xlu1 %457  ;;  %v1220_v55 = vcombine.low %v587_v48, %v588_v50  ;;  %v1216_v56 = vcombine.low %v491_v49, %v492_v51 }
  0x9a   : > { %v466_v59 = vrot.slane %v458_v54, %v1541_v37 }
  0x9b   : > { %687 = vrot.lane.b32.xlu1 %v1220_v55, %s1386_s21  ;;  %659 = vrot.lane.b32.xlu0 %v1216_v56, %s1387_s14  ;;  %v493_v61 = vmul.bf16 %v455_v53, %v1565_v57 }
  0x9c   : > { %v414_v60 = vpop.permute.xlu0 %413  ;;  %v494_v62 = vmul.bf16 %v466_v59, %v1568_v58 }
  0x9d   : > { %v422_v8 = vrot.slane %v414_v60, %v1541_v37 }
  0x9e   : > { %v554_v63 = vpop.permute.xlu1 %553  ;;  %v1217_v7 = vcombine.low %v493_v61, %v494_v62 }
  0x9f   : > { %383 = vperm.xlu1 %1316, %v1450_v10   ;;  %371 = vperm.xlu0 %1317, %v1447_v9   ;;  %v562_v2 = vrot.slane %v554_v63, %v1541_v37  ;;  %v490_v10 = vmul.bf16 %v422_v8, %v274_v12 }
  0xa1   : > { %v543_v4 = vpop.permute.xlu0 %542  ;;  %v590_v5 = vmul.bf16 %v562_v2, %v1568_v58 }
  0xa2   : > { %v551_v11 = vrot.slane %v543_v4, %v1541_v37 }
  0xa3   : > { %v403_v13 = vpop.permute.xlu1 %402  ;;  %661 = vrot.lane.b32.xlu0 %v1217_v7, %s1387_s14 }
  0xa4   : > { %v589_v6 = vmul.bf16 %v551_v11, %v1565_v57  ;;  %v411_v9 = vrot.slane %v403_v13, %v1541_v37  ;;  %1318 = vset.pattern.permute.xlu0 %v1381_v0 }
  0xa5   : > { %v499_v20 = vpop.permute.xlu0 %498 }
  0xa6   : > { %v489_v15 = vmul.bf16 %v411_v9, %v273_v14  ;;  %v1221_v16 = vcombine.low %v589_v6, %v590_v5  ;;  %v507_v26 = vrot.slane %v499_v20, %v1541_v37  ;;  %v1338_v9 = vld [vmem:[%s1539_s10 + $0x10] sm:$0xff]  }
  0xa7   : > { %v469_v17 = vpop.permute.xlu1 %468 }
  0xa8   : > { %689 = vrot.lane.b32.xlu1 %v1221_v16, %s1386_s21  ;;  %v1215_v18 = vcombine.low %v489_v15, %v490_v10  ;;  %v477_v19 = vrot.slane %v469_v17, %v1541_v37  ;;  %v585_v31 = vmul.bf16 %v507_v26, %v273_v14 }
  0xa9   : > { %v576_v27 = vpop.permute.xlu0 %575 }
  0xaa   : > { %657 = vrot.lane.b32.xlu0 %v1215_v18, %s1387_s14  ;;  %v495_v0 = vmul.bf16 %v477_v19, %v1597_v21  ;;  %v584_v32 = vrot.slane %v576_v27, %v1541_v37  ;;  %v1340_v27 = vld [vmem:[%s1539_s10 + $0x18] sm:$0xff]  }
  0xab   : > { %v480_v22 = vpop.permute.xlu1 %479 }
  0xac   : > { %v488_v24 = vrot.slane %v480_v22, %v1541_v37  ;;  %v592_v41 = vmul.bf16 %v584_v32, %v1600_v23 }
  0xae   : > { %v496_v25 = vmul.bf16 %v488_v24, %v1600_v23  ;;  %v336_v39 = vpop.permute.xlu0 %335  ;;  %v1339_v24 = vld [vmem:[%s1539_s10] sm:$0xff]  }
  0xaf   : > { %v344_v40 = vrot.slane %v336_v39, %v1541_v37 }
  0xb0   : > { %v510_v28 = vpop.permute.xlu1 %509  ;;  %v1218_v29 = vcombine.low %v495_v0, %v496_v25 }
  0xb1   : > { %v518_v30 = vrot.slane %v510_v28, %v1541_v37  ;;  %v396_v48 = vmul.bf16 %v344_v40, %v1555_v44 }
  0xb2   : > { %663 = vrot.lane.b32.xlu1 %v1218_v29, %s1387_s14  ;;  %v300_v54 = vpop.permute.xlu0 %299 }
  0xb3   : > { %v586_v34 = vmul.bf16 %v518_v30, %v274_v12  ;;  %v308_v59 = vrot.slane %v300_v54, %v1541_v37 }
  0xb4   : > { %v565_v35 = vpop.permute.xlu1 %564 }
  0xb5   : > { %v573_v36 = vrot.slane %v565_v35, %v1541_v37  ;;  %v1219_v38 = vcombine.low %v585_v31, %v586_v34  ;;  %v393_v62 = vmul.bf16 %v308_v59, %v273_v14 }
  0xb7   : > { %v591_v43 = vmul.bf16 %v573_v36, %v1597_v21  ;;  %685 = vrot.lane.b32.xlu0 %v1219_v38, %s1386_s21 }
  0xb9   : > { %v1222_v45 = vcombine.low %v591_v43, %v592_v41  ;;  %v324_v46 = vpop.permute.xlu1 %323 }
  0xba   : > { %v332_v47 = vrot.slane %v324_v46, %v1541_v37 }
  0xbb   : > { %691 = vrot.lane.b32.xlu1 %v1222_v45, %s1386_s21 }
  0xbc   : > { %v395_v49 = vmul.bf16 %v332_v47, %v1552_v42 }
  0xbd   : > { %v348_v50 = vpop.permute.xlu1 %347 }
  0xbe   : > { %v356_v51 = vrot.slane %v348_v50, %v1541_v37  ;;  %v1212_v52 = vcombine.low %v395_v49, %v396_v48  ;;  %v1008_v49 = vand.u32 127, %v305_v33 }
  0xc0   : > { %v397_v55 = vmul.bf16 %v356_v51, %v1565_v57  ;;  %v1335_v57 = vld [vmem:[%s1539_s10 + $0x8] sm:$0xff]   ;;  %vm1009_vm6 = vcmp.lt.s32.totalorder %v1008_v49, 8 }
  0xc1   : > { %v360_v53 = vpop.permute.xlu1 %359 }
  0xc2   : > { %v368_v56 = vrot.slane %v360_v53, %v1541_v37 }
  0xc4   : > { %v398_v60 = vmul.bf16 %v368_v56, %v1568_v58 }
  0xc5   : > { %v312_v44 = vpop.permute.xlu1 %311 }
  0xc6   : > { %v1213_v61 = vcombine.low %v397_v55, %v398_v60  ;;  %v320_v42 = vrot.slane %v312_v44, %v1541_v37 }
  0xc8   : > { %v394_v63 = vmul.bf16 %v320_v42, %v274_v12 }
  0xca   : > { %v1211_v1 = vcombine.low %v393_v62, %v394_v63 }
  0xe9   : > { %v1260_v58 = vpop.f32.mrb[0].mxu0 }
  0xea   : > { %v818_v8 = vpop.f32.mrb[1].mxu0 }
  0xeb   : > { %v1261_v11 = vpop.f32.mrb[2].mxu0 }
  0xec   : > { %v821_v13 = vpop.f32.mrb[3].mxu0 }
 0x10d   : > { %v688_v2 = vpop.permute.xlu1 %687  ;;  %v660_v3 = vpop.permute.xlu0 %659 }
 0x10e   : > { %v699_v4 = vsel %vm693_vm3, %v1212_v52, %v660_v3 }
 0x10f   : > { %v710_v7 = vsel %vm706_vm4, %v699_v4, %v688_v2 }
 0x110   : > { %1246 = vmatprep.mubr.msk.bf16.mxu1 %vm933_vm5, %v710_v7 }
 0x111   : > { %983 = vmatmul.mubr.bf16.vlgmr.msra.gmra.mrb[0].mxu1 %v1335_v57 }
 0x11e   : > { %v384_v12 = vpop.permute.xlu1 %383  ;;  %v372_v14 = vpop.permute.xlu0 %371 }
 0x11f   : > { %v392_v10 = vrot.slane %v384_v12, %v1541_v37  ;;  %v380_v15 = vrot.slane %v372_v14, %v1541_v37 }
 0x121   : > { %v400_v19 = vmul.bf16 %v392_v10, %v1600_v23  ;;  %v399_v20 = vmul.bf16 %v380_v15, %v1597_v21  ;;  %v1264_v21 = vpop.f32.mrb[4].mxu0 }
 0x122   : > { %v690_v5 = vpop.permute.xlu1 %689  ;;  %v662_v6 = vpop.permute.xlu0 %661 }
 0x123   : > { %v702_v16 = vsel %vm693_vm3, %v1213_v61, %v662_v6  ;;  %v1214_v26 = vcombine.low %v399_v20, %v400_v19  ;;  %v834_v23 = vpop.f32.mrb[5].mxu0 }
 0x124   : > { %v712_v17 = vsel %vm706_vm4, %v702_v16, %v690_v5  ;;  %v1265_v31 = vpop.f32.mrb[6].mxu0 }
 0x125   : > { %1247 = vmatprep.mubr.msk.bf16.mxu1 %vm933_vm5, %v712_v17  ;;  %v837_v32 = vpop.f32.mrb[7].mxu0 }
 0x126   : > { %991 = vmatmul.mubr.bf16.gmra.mrb[4].mxu1 %v1338_v9  ;;  %v658_v18 = vpop.permute.xlu0 %657  ;;  %v664_v22 = vpop.permute.xlu1 %663 }
 0x127   : > { %v696_v0 = vsel %vm693_vm3, %v1211_v1, %v658_v18  ;;  %v705_v28 = vsel %vm693_vm3, %v1214_v26, %v664_v22 }
 0x12a   : > { %v686_v25 = vpop.permute.xlu0 %685 }
 0x12b   : > { %v708_v37 = vsel %vm706_vm4, %v696_v0, %v686_v25 }
 0x12c   : > { %1245 = vmatprep.mubr.msk.bf16.mxu0 %vm933_vm5, %v708_v37 }
 0x12d   : > { %v692_v29 = vpop.permute.xlu1 %691  ;;  %975 = vmatmul.mubr.bf16.vlgmr.msra.gmra.mrb[8].mxu0 %v1339_v24 }
 0x12e   : > { %v714_v30 = vsel %vm706_vm4, %v705_v28, %v692_v29 }
 0x12f   : > { %1248 = vmatprep.mubr.msk.bf16.mxu1 %vm933_vm5, %v714_v30 }
 0x130   : > { %999 = vmatmul.mubr.bf16.gmra.mrb[8].mxu1 %v1340_v27 }
 0x1e4   : > { %v984_v34 = vpop.f32.mrb[0].mxu1 }
 0x1e5   : > { %v985_v35 = vadd.f32 %v1260_v58, %v984_v34  ;;  %v986_v36 = vpop.f32.mrb[1].mxu1 }
 0x1e6   : > { %v987_v38 = vpop.f32.mrb[2].mxu1 }
 0x1e7   : > { %v988_v39 = vadd.f32 %v1261_v11, %v987_v38  ;;  %v989_v40 = vpop.f32.mrb[3].mxu1  ;;  %v1654_v63 = vsel %vm1009_vm6, %v985_v35, -3e+38 }
 0x1e9   : > { %v1662_v2 = vsel %vm1009_vm6, %v988_v39, -3e+38 }
 0x1f9   : > { %v992_v41 = vpop.f32.mrb[4].mxu1 }
 0x1fa   : > { %v993_v43 = vadd.f32 %v992_v41, %v834_v23  ;;  %v994_v45 = vpop.f32.mrb[5].mxu1 }
 0x1fb   : > { %v995_v46 = vpop.f32.mrb[6].mxu1 }
 0x1fc   : > { %v996_v47 = vadd.f32 %v995_v46, %v837_v32  ;;  %v997_v48 = vpop.f32.mrb[7].mxu1  ;;  %v1658_v1 = vsel %vm1009_vm6, %v993_v43, -3e+38 }
 0x1fe   : > { %v1670_v57 = vsel %vm1009_vm6, %v996_v47, -3e+38 }
 0x200   : > { %v976_v50 = vpop.f32.mrb[8].mxu0 }
 0x201   : > { %v977_v51 = vadd.f32 %v976_v50, %v818_v8  ;;  %v978_v52 = vpop.f32.mrb[9].mxu0 }
 0x202   : > { %v979_v53 = vpop.f32.mrb[10].mxu0 }
 0x203   : > { %v980_v54 = vadd.f32 %v979_v53, %v821_v13  ;;  %v981_v55 = vpop.f32.mrb[11].mxu0  ;;  %v1000_v56 = vpop.f32.mrb[8].mxu1  ;;  %v1646_v59 = vsel %vm1009_vm6, %v977_v51, -3e+38 }
 0x204   : > { %v1001_v60 = vadd.f32 %v1264_v21, %v1000_v56  ;;  %v1002_v44 = vpop.f32.mrb[9].mxu1  ;;  %1018 = vmax.xlane.f32.xlu0 %v1646_v59 }
 0x205   : > { %v1003_v61 = vpop.f32.mrb[10].mxu1  ;;  %v1650_v62 = vsel %vm1009_vm6, %v980_v54, -3e+38 }
 0x206   : > { %v1004_v33 = vadd.f32 %v1265_v31, %v1003_v61  ;;  %1020 = vmax.xlane.f32.xlu1 %v1650_v62  ;;  %v1005_v42 = vpop.f32.mrb[11].mxu1  ;;  %v1666_v3 = vsel %vm1009_vm6, %v1001_v60, -3e+38 }
 0x208   : > { %1022 = vmax.xlane.f32.xlu0 %v1654_v63  ;;  %v1674_v4 = vsel %vm1009_vm6, %v1004_v33, -3e+38 }
 0x20a   : > { %1026 = vmax.xlane.f32.xlu1 %v1658_v1 }
 0x20c   : > { %1024 = vmax.xlane.f32.xlu0 %v1662_v2 }
 0x20e   : > { %1030 = vmax.xlane.f32.xlu1 %v1666_v3 }
 0x210   : > { %1028 = vmax.xlane.f32.xlu0 %v1670_v57 }
 0x214   : > { %1032 = vmax.xlane.f32.xlu0 %v1674_v4 }
 0x291   : > { %v1677_v7 = vpop.xlane.xlu0 %1018 }
 0x292   : > { %v1034_v58 = vsub.f32 %v1646_v59, %v1677_v7 }
 0x293   : > { %v1681_v8 = vpop.xlane.xlu1 %1020 }
 0x294   : > { %v1042_v11 = vmul.f32 1.442695, %v1034_v58  ;;  %v1035_v13 = vsub.f32 %v1650_v62, %v1681_v8 }
 0x295   : > { %v1685_v12 = vpop.xlane.xlu0 %1022 }
 0x296   : > { %1341 = vpow2.f32 %v1042_v11  ;;  %v1044_v14 = vmul.f32 1.442695, %v1035_v13  ;;  %v1036_v5 = vsub.f32 %v1654_v63, %v1685_v12 }
 0x297   : > { %v1689_v6 = vpop.xlane.xlu1 %1026 }
 0x298   : > { %1343 = vpow2.f32 %v1044_v14  ;;  %v1046_v9 = vmul.f32 1.442695, %v1036_v5  ;;  %v1038_v10 = vsub.f32 %v1658_v1, %v1689_v6 }
 0x299   : > { %v1693_v15 = vpop.xlane.xlu0 %1024 }
 0x29a   : > { %1345 = vpow2.f32 %v1046_v9  ;;  %v1050_v16 = vmul.f32 1.442695, %v1038_v10  ;;  %v1037_v17 = vsub.f32 %v1662_v2, %v1693_v15 }
 0x29b   : > { %v1697_v18 = vpop.xlane.xlu1 %1030 }
 0x29c   : > { %v1048_v19 = vmul.f32 1.442695, %v1037_v17  ;;  %v1040_v20 = vsub.f32 %v1666_v3, %v1697_v18  ;;  %1347 = vpow2.f32 %v1050_v16 }
 0x29d   : > { %v1701_v22 = vpop.xlane.xlu0 %1028 }
 0x29e   : > { %1349 = vpow2.f32 %v1048_v19  ;;  %v1054_v24 = vmul.f32 1.442695, %v1040_v20  ;;  %v1039_v0 = vsub.f32 %v1670_v57, %v1701_v22 }
 0x2a0   : > { %v1342_v25 = vpop.eup %1341  ;;  %v1052_v26 = vmul.f32 1.442695, %v1039_v0  ;;  %1351 = vpow2.f32 %v1054_v24 }
 0x2a1   : > { %1058 = vadd.xlane.f32.xlu1 %v1342_v25  ;;  %v1705_v37 = vpop.xlane.xlu0 %1032 }
 0x2a2   : > { %v1344_v27 = vpop.eup %1343  ;;  %1353 = vpow2.f32 %v1052_v26  ;;  %v1041_v28 = vsub.f32 %v1674_v4, %v1705_v37 }
 0x2a3   : > { %1060 = vadd.xlane.f32.xlu0 %v1344_v27 }
 0x2a4   : > { %v1346_v29 = vpop.eup %1345  ;;  %v1056_v30 = vmul.f32 1.442695, %v1041_v28 }
 0x2a5   : > { %1062 = vadd.xlane.f32.xlu1 %v1346_v29 }
 0x2a6   : > { %1355 = vpow2.f32 %v1056_v30  ;;  %v1348_v21 = vpop.eup %1347 }
 0x2a8   : > { %v1350_v23 = vpop.eup %1349 }
 0x2a9   : > { %1066 = vadd.xlane.f32.xlu1 %v1348_v21  ;;  %1064 = vadd.xlane.f32.xlu0 %v1350_v23 }
 0x2aa   : > { %v1352_v31 = vpop.eup %1351 }
 0x2ac   : > { %v1354_v32 = vpop.eup %1353 }
 0x2ad   : > { %1070 = vadd.xlane.f32.xlu1 %v1352_v31  ;;  %1068 = vadd.xlane.f32.xlu0 %v1354_v32 }
 0x2b0   : > { %v1356_v34 = vpop.eup %1355 }
 0x2b1   : > { %1072 = vadd.xlane.f32.xlu0 %v1356_v34 }
 0x32e   : > { %v1059_v35 = vpop.xlane.xlu1 %1058 }
 0x32f   : > { %1357 = vlog2.f32 %v1059_v35 }
 0x330   : > { %v1061_v36 = vpop.xlane.xlu0 %1060 }
 0x331   : > { %1359 = vlog2.f32 %v1061_v36 }
 0x332   : > { %v1063_v38 = vpop.xlane.xlu1 %1062 }
 0x333   : > { %1361 = vlog2.f32 %v1063_v38 }
 0x336   : > { %v1067_v39 = vpop.xlane.xlu1 %1066  ;;  %v1065_v40 = vpop.xlane.xlu0 %1064 }
 0x337   : > { %1363 = vlog2.f32 %v1067_v39 }
 0x338   : > { %1365 = vlog2.f32 %v1065_v40 }
 0x339   : > { %v1358_v41 = vpop.eup %1357 }
 0x33a   : > { %v1075_v43 = vmul.f32 0.6931472, %v1358_v41  ;;  %v1071_v45 = vpop.xlane.xlu1 %1070  ;;  %v1069_v46 = vpop.xlane.xlu0 %1068 }
 0x33b   : > { %v1360_v47 = vpop.eup %1359  ;;  %1367 = vlog2.f32 %v1071_v45 }
 0x33c   : > { %v1090_v48 = vadd.f32 %v1075_v43, %v1677_v7  ;;  %v1077_v49 = vmul.f32 0.6931472, %v1360_v47  ;;  %1369 = vlog2.f32 %v1069_v46 }
 0x33d   : > { %v1362_v50 = vpop.eup %1361 }
 0x33e   : > { %v1098_v51 = vsub.f32 %v1646_v59, %v1090_v48  ;;  %v1091_v52 = vadd.f32 %v1077_v49, %v1681_v8  ;;  %v1079_v53 = vmul.f32 0.6931472, %v1362_v50  ;;  %v1073_v54 = vpop.xlane.xlu0 %1072 }
 0x33f   : > { %1371 = vlog2.f32 %v1073_v54 }
 0x340   : > { %1106 = vst [vmem:[%s1714_s19] sm:$0xff] %v1098_v51  ;;  %v1099_v55 = vsub.f32 %v1650_v62, %v1091_v52  ;;  %v1092_v56 = vadd.f32 %v1079_v53, %v1685_v12 }
 0x341   : > { %v1364_v60 = vpop.eup %1363 }
 0x342   : > { %v1366_v44 = vpop.eup %1365  ;;  %1107 = vst [vmem:[%s1714_s19 + $0x8] sm:$0xff] %v1099_v55  ;;  %v1100_v61 = vsub.f32 %v1654_v63, %v1092_v56  ;;  %v1083_v33 = vmul.f32 0.6931472, %v1364_v60 }
 0x343   : > { %v1081_v42 = vmul.f32 0.6931472, %v1366_v44 }
 0x344   : > { %1108 = vst [vmem:[%s1714_s19 + $0x10] sm:$0xff] %v1100_v61  ;;  %v1094_v59 = vadd.f32 %v1083_v33, %v1689_v6 }
 0x345   : > { %v1368_v7 = vpop.eup %1367  ;;  %v1093_v58 = vadd.f32 %v1081_v42, %v1693_v15 }
 0x346   : > { %v1370_v62 = vpop.eup %1369  ;;  %v1102_v8 = vsub.f32 %v1658_v1, %v1094_v59  ;;  %v1087_v11 = vmul.f32 0.6931472, %v1368_v7 }
 0x347   : > { %v1101_v13 = vsub.f32 %v1662_v2, %v1093_v58  ;;  %v1085_v12 = vmul.f32 0.6931472, %v1370_v62 }
 0x348   : > { %1110 = vst [vmem:[%s1714_s19 + $0x20] sm:$0xff] %v1102_v8  ;;  %v1096_v63 = vadd.f32 %v1087_v11, %v1697_v18 }
 0x349   : > { %v1372_v14 = vpop.eup %1371  ;;  %1109 = vst [vmem:[%s1714_s19 + $0x18] sm:$0xff] %v1101_v13  ;;  %v1095_v5 = vadd.f32 %v1085_v12, %v1701_v22 }
 0x34a   : > { %v1104_v6 = vsub.f32 %v1666_v3, %v1096_v63  ;;  %v1089_v9 = vmul.f32 0.6931472, %v1372_v14 }
 0x34b   : > { %v1103_v10 = vsub.f32 %v1670_v57, %v1095_v5 }
 0x34c   : > { %1112 = vst [vmem:[%s1714_s19 + $0x30] sm:$0xff] %v1104_v6  ;;  %v1097_v1 = vadd.f32 %v1089_v9, %v1705_v37 }
 0x34d   : > { %1111 = vst [vmem:[%s1714_s19 + $0x28] sm:$0xff] %v1103_v10 }
 0x34e   : > { %v1105_v15 = vsub.f32 %v1674_v4, %v1097_v1 }
 0x350   : > { %1113 = vst [vmem:[%s1714_s19 + $0x38] sm:$0xff] %v1105_v15 }
 0x351 PF: > { %s15_s18 = sadd.s32 1, %s1379_s18  }
 0x352   : > { %p12_p4 = scmp.ge.s32.totalorder %s15_s18, 4  }
 0x354   :  { %14 = sbr.rel (!%p12_p4) target bundleno = 1 (0x1), region = 76 }

</bundles_post_ra>
